<compile_context>
chip_gen: v7x
topology: tpu7x:2x2x1
jax: 0.10.0
libtpu: 0.0.40
codegen_flags: <defaults>
</compile_context>

<pallas_src>
import jax
import jax.numpy as jnp
from jax.experimental import pallas as pl
from jax.experimental.pallas import tpu as pltpu


def _make_kernel(num_layers, T, B, D, H, C):
    """Build the LSTM-classifier kernel for static (num_layers, T, B, D, H, C)."""

    def kernel(*refs):
        # refs layout:
        #   [0]                x_ref     (T*B, D)    bf16  (t-major rows: row = t*B + b)
        #   [1 + 3*l + 0]      w_ih_l    (D_in, 4H)  bf16  (pre-transposed, gates i|f|g|o)
        #   [1 + 3*l + 1]      w_hh_l    (H,   4H)   bf16  (pre-transposed, gates i|f|g|o)
        #   [1 + 3*l + 2]      b_l       (1,   4H)   f32   (= b_ih + b_hh)
        #   [1 + 3*L + 0..3]   fc1_w^T (H,128) bf16, fc1_b (1,128) f32,
        #                      fc2_w^T (128,C) bf16, fc2_b (1,C)   f32
        #   [1 + 3*L + 4]      out_ref   (B, C)      f32
        #   [1 + 3*L + 5]      gates_in  (T*B, 4H)   f32  VMEM scratch (lane-dense)
        #   [1 + 3*L + 6]      seq_buf   (T*B, H)    bf16 VMEM scratch
        x_ref = refs[0]
        base = 1 + 3 * num_layers
        fc1_w_ref, fc1_b_ref, fc2_w_ref, fc2_b_ref = refs[base:base + 4]
        out_ref = refs[base + 4]
        gates_in_ref = refs[base + 5]
        seq_buf_ref = refs[base + 6]

        h = jnp.zeros((B, H), jnp.float32)

        for l in range(num_layers):
            w_ih_ref = refs[1 + 3 * l + 0]     # (D_in, 4H) bf16
            w_hh_ref = refs[1 + 3 * l + 1]     # (H,   4H)  bf16
            b_ref = refs[1 + 3 * l + 2]        # (1,   4H)  f32

            # ---- Hoisted, fused input projection (+ bias), off the serial
            # critical path: one (T*B, D_in) x (D_in, 4H) matmul per layer. ----
            x_in = x_ref[...] if l == 0 else seq_buf_ref[...]     # bf16
            gates_in_ref[...] = (
                jnp.dot(x_in, w_ih_ref[...],
                        preferred_element_type=jnp.float32)
                + b_ref[...])                                     # (T*B, 4H) f32

            # Loop-invariant recurrent weight, loaded once per layer.
            w_hh = w_hh_ref[...]                                  # (H, 4H) bf16

            h = jnp.zeros((B, H), jnp.float32)
            c = jnp.zeros((B, H), jnp.float32)
            write_seq = l < num_layers - 1   # last layer's per-step outputs are dead

            # T is static & small: full trace-time unroll (static slice starts).
            for t in range(T):
                rows = pl.ds(t * B, B)
                hb = h.astype(jnp.bfloat16)
                # One fused (B,H)x(H,4H) matmul per step; lane-dense (B,128) result.
                pre = gates_in_ref[rows, :] + jnp.dot(
                    hb, w_hh, preferred_element_type=jnp.float32)  # (B, 4H) f32
                # 2 EUP passes over the packed 128-lane pre-activation,
                # then static lane slices per gate (i, f, g, o).
                sig = jax.nn.sigmoid(pre)
                th = jnp.tanh(pre)
                i_g = sig[:, 0 * H:1 * H]
                f_g = sig[:, 1 * H:2 * H]
                g_g = th[:, 2 * H:3 * H]
                o_g = sig[:, 3 * H:4 * H]
                c = f_g * c + i_g * g_g
                h = o_g * jnp.tanh(c)
                if write_seq:
                    seq_buf_ref[rows, :] = h.astype(jnp.bfloat16)

        # Classifier head: fc_1 -> (dropout: identity in eval) -> ReLU -> fc_2
        z = (jnp.dot(h.astype(jnp.bfloat16), fc1_w_ref[...],
                     preferred_element_type=jnp.float32) + fc1_b_ref[...])
        z = jnp.maximum(z, 0.0)
        out_ref[...] = (jnp.dot(z.astype(jnp.bfloat16), fc2_w_ref[...],
                                preferred_element_type=jnp.float32)
                        + fc2_b_ref[...])

    return kernel


def lstm_model_forward(x, params):
    """x: (B, T, D) float32, batch_first like the PyTorch module."""
    B, T, D = x.shape
    H = params["lstm"][0]["w_hh"].shape[1]       # w_hh: (4H, H)
    C = params["fc2_w"].shape[0]                 # fc2_w: (C, 128)
    num_layers = len(params["lstm"])

    # Time-major then fuse (T, B) so each layer's input projection is a single
    # 2-D matmul in-kernel; rows are t-major: row = t*B + b.
    x2d = (jnp.transpose(x, (1, 0, 2))
           .reshape(T * B, D)
           .astype(jnp.bfloat16))

    inputs = [x2d]
    for lp in params["lstm"]:
        # Fused per-layer weights, pre-transposed for row-major right-mult on
        # the MXU; PyTorch gate order (i, f, g, o) preserved along the 4H axis.
        inputs.append(lp["w_ih"].T.astype(jnp.bfloat16))          # (D_in, 4H)
        inputs.append(lp["w_hh"].T.astype(jnp.bfloat16))          # (H,   4H)
        inputs.append((lp["b_ih"] + lp["b_hh"])
                      .astype(jnp.float32)[None, :])              # (1,   4H)
    inputs.append(params["fc1_w"].T.astype(jnp.bfloat16))         # (H, 128)
    inputs.append(params["fc1_b"][None, :].astype(jnp.float32))
    inputs.append(params["fc2_w"].T.astype(jnp.bfloat16))         # (128, C)
    inputs.append(params["fc2_b"][None, :].astype(jnp.float32))

    kernel = _make_kernel(num_layers, T, B, D, H, C)

    return pl.pallas_call(
        kernel,
        out_shape=jax.ShapeDtypeStruct((B, C), jnp.float32),
        in_specs=[pl.BlockSpec(memory_space=pltpu.MemorySpace.VMEM)] * len(inputs),
        out_specs=pl.BlockSpec(memory_space=pltpu.MemorySpace.VMEM),
        scratch_shapes=[
            pltpu.VMEM((T * B, 4 * H), jnp.float32),  # fused, lane-dense pre-activations
            pltpu.VMEM((T * B, H), jnp.bfloat16),     # previous layer's output sequence
        ],
        # Real footprint is well under 1 MiB; 4 MiB is safe on v5e/v6e/v7x.
        compiler_params=pltpu.CompilerParams(vmem_limit_bytes=4 * 1024 * 1024),
    )(*inputs)


def _reference_forward(x, params, matmul_dtype=jnp.float32):
    """Pure-JAX reference with identical (eval-mode) semantics.

    matmul_dtype controls the precision of the matmul *operands* (accumulation
    stays f32), matching the kernel's bf16-on-MXU / f32-elementwise split.
    """
    B, T, D = x.shape
    H = params["lstm"][0]["w_hh"].shape[1]

    def mm(a, w):  # a @ w.T with operands in matmul_dtype, f32 accumulation
        return jnp.dot(a.astype(matmul_dtype), w.T.astype(matmul_dtype),
                       preferred_element_type=jnp.float32)

    seq = x.astype(jnp.float32)                  # (B, T, D_in)
    h = jnp.zeros((B, H), jnp.float32)
    for lp in params["lstm"]:
        b = (lp["b_ih"] + lp["b_hh"]).astype(jnp.float32)
        h = jnp.zeros((B, H), jnp.float32)
        c = jnp.zeros((B, H), jnp.float32)
        outs = []
        for t in range(T):
            gates = mm(seq[:, t, :], lp["w_ih"]) + mm(h, lp["w_hh"]) + b
            i_g = jax.nn.sigmoid(gates[:, 0 * H:1 * H])
            f_g = jax.nn.sigmoid(gates[:, 1 * H:2 * H])
            g_g = jnp.tanh(gates[:, 2 * H:3 * H])
            o_g = jax.nn.sigmoid(gates[:, 3 * H:4 * H])
            c = f_g * c + i_g * g_g
            h = o_g * jnp.tanh(c)
            outs.append(h)
        seq = jnp.stack(outs, axis=1)            # (B, T, H)
    z = jnp.maximum(mm(h, params["fc1_w"]) + params["fc1_b"], 0.0)
    return mm(z, params["fc2_w"]) + params["fc2_b"]


def _init_params(key, num_classes, input_size, hidden_size, num_layers):
    """Deterministic init mirroring the PyTorch module's parameter shapes."""
    params = {"lstm": []}
    k = 1.0 / jnp.sqrt(hidden_size)
    keys = jax.random.split(key, 4 * num_layers + 4)
    for l in range(num_layers):
        d_in = input_size if l == 0 else hidden_size
        params["lstm"].append({
            "w_ih": jax.random.uniform(keys[4 * l + 0], (4 * hidden_size, d_in),
                                       jnp.float32, -k, k),
            "w_hh": jax.random.uniform(keys[4 * l + 1], (4 * hidden_size, hidden_size),
                                       jnp.float32, -k, k),
            "b_ih": jax.random.uniform(keys[4 * l + 2], (4 * hidden_size,),
                                       jnp.float32, -k, k),
            "b_hh": jax.random.uniform(keys[4 * l + 3], (4 * hidden_size,),
                                       jnp.float32, -k, k),
        })
    kf = 1.0 / jnp.sqrt(hidden_size)
    params["fc1_w"] = jax.random.uniform(keys[-4], (128, hidden_size),
                                         jnp.float32, -kf, kf)
    params["fc1_b"] = jax.random.uniform(keys[-3], (128,), jnp.float32, -kf, kf)
    kf2 = 1.0 / jnp.sqrt(128.0)
    params["fc2_w"] = jax.random.uniform(keys[-2], (num_classes, 128),
                                         jnp.float32, -kf2, kf2)
    params["fc2_b"] = jax.random.uniform(keys[-1], (num_classes,),
                                         jnp.float32, -kf2, kf2)
    return params


if __name__ == "__main__":
    # Small shapes consistent with the module: batch=2, seq=8, input=16, hidden=32.
    B, T, D, H, L, C = 2, 8, 16, 32, 2, 4

    key = jax.random.PRNGKey(0)
    kx, kp = jax.random.split(key)
    x = jax.random.normal(kx, (B, T, D), jnp.float32)
    params = _init_params(kp, num_classes=C, input_size=D,
                          hidden_size=H, num_layers=L)

    out = lstm_model_forward(x, params)
    out = jax.block_until_ready(out)
    assert out.shape == (B, C)

    # Match against a reference with the same bf16-operand / f32-accumulate
    # matmul policy (tight), and against the pure-f32 reference (loose) to
    # confirm the bf16 MXU cast preserves the module's semantics.
    ref_bf16 = _reference_forward(x, params, matmul_dtype=jnp.bfloat16)
    ref_f32 = _reference_forward(x, params, matmul_dtype=jnp.float32)
    assert jnp.allclose(out, ref_bf16, rtol=5e-3, atol=5e-3), (out, ref_bf16)
    assert jnp.allclose(out, ref_f32, rtol=5e-2, atol=5e-2), (out, ref_f32)

    # TODO(synk): training-mode stochastic dropout (nn.Dropout / LSTM inter-layer
    # dropout) is not modeled; eval-mode (identity) semantics are implemented.
    print("KERNEL_OK")
</pallas_src>

<mosaic_0001>
module attributes {stable_mosaic.version = 11 : i64} {
  func.func @kernel(%arg0: memref<16x16xbf16, #tpu.memory_space<vmem>>, %arg1: memref<16x128xbf16, #tpu.memory_space<vmem>>, %arg2: memref<32x128xbf16, #tpu.memory_space<vmem>>, %arg3: memref<1x128xf32, #tpu.memory_space<vmem>>, %arg4: memref<32x128xbf16, #tpu.memory_space<vmem>>, %arg5: memref<32x128xbf16, #tpu.memory_space<vmem>>, %arg6: memref<1x128xf32, #tpu.memory_space<vmem>>, %arg7: memref<32x128xbf16, #tpu.memory_space<vmem>>, %arg8: memref<1x128xf32, #tpu.memory_space<vmem>>, %arg9: memref<128x4xbf16, #tpu.memory_space<vmem>>, %arg10: memref<1x4xf32, #tpu.memory_space<vmem>>, %arg11: memref<2x4xf32, #tpu.memory_space<vmem>>, %arg12: memref<16x128xf32, #tpu.memory_space<vmem>>, %arg13: memref<16x32xbf16, #tpu.memory_space<vmem>>) attributes {dimension_semantics = [], scalar_prefetch = 0 : i64, scratch_operands = 2 : i64, tpu.core_type = #tpu.core_type<tc>} {
    %c0 = arith.constant 0 : index
    %c0_0 = arith.constant 0 : index
    %0 = vector.load %arg0[%c0, %c0_0] : memref<16x16xbf16, #tpu.memory_space<vmem>>, vector<16x16xbf16>
    %c0_1 = arith.constant 0 : index
    %c0_2 = arith.constant 0 : index
    %1 = vector.load %arg1[%c0_1, %c0_2] : memref<16x128xbf16, #tpu.memory_space<vmem>>, vector<16x128xbf16>
    %cst = arith.constant dense<0.000000e+00> : vector<16x128xf32>
    %2 = tpu.matmul %0, %1, %cst {dimension_numbers = #tpu.dot_dimension_numbers<[1], [0], [0], [1], [0, 0, 1, 1], [], []>} : vector<16x16xbf16>, vector<16x128xbf16>, vector<16x128xf32> -> vector<16x128xf32>
    %c0_3 = arith.constant 0 : index
    %c0_4 = arith.constant 0 : index
    %3 = vector.load %arg3[%c0_3, %c0_4] : memref<1x128xf32, #tpu.memory_space<vmem>>, vector<1x128xf32>
    %4 = vector.broadcast %3 : vector<1x128xf32> to vector<16x128xf32>
    %5 = arith.addf %2, %4 : vector<16x128xf32>
    %c0_5 = arith.constant 0 : index
    %c0_6 = arith.constant 0 : index
    %6 = vector.load %arg12[%c0_5, %c0_6] : memref<16x128xf32, #tpu.memory_space<vmem>>, vector<16x128xf32>
    tpu.vector_store %arg12[%c0_5, %c0_6], %5 {strides = array<i32>} : memref<16x128xf32, #tpu.memory_space<vmem>>, vector<16x128xf32>,
    %c0_7 = arith.constant 0 : index
    %c0_8 = arith.constant 0 : index
    %7 = vector.load %arg2[%c0_7, %c0_8] : memref<32x128xbf16, #tpu.memory_space<vmem>>, vector<32x128xbf16>
    %cst_9 = arith.constant 0.000000e+00 : f32
    %8 = vector.broadcast %cst_9 : f32 to vector<2x32xf32>
    %cst_10 = arith.constant 0.000000e+00 : f32
    %9 = vector.broadcast %cst_10 : f32 to vector<2x32xf32>
    %10 = arith.truncf %8 : vector<2x32xf32> to vector<2x32xbf16>
    %c0_11 = arith.constant 0 : index
    %c0_12 = arith.constant 0 : index
    %11 = vector.load %arg12[%c0_11, %c0_12] : memref<16x128xf32, #tpu.memory_space<vmem>>, vector<2x128xf32>
    %cst_13 = arith.constant dense<0.000000e+00> : vector<2x128xf32>
    %12 = tpu.matmul %10, %7, %cst_13 {dimension_numbers = #tpu.dot_dimension_numbers<[1], [0], [0], [1], [0, 0, 1, 1], [], []>} : vector<2x32xbf16>, vector<32x128xbf16>, vector<2x128xf32> -> vector<2x128xf32>
    %13 = arith.addf %11, %12 : vector<2x128xf32>
    %14 = arith.negf %13 : vector<2x128xf32>
    %15 = math.exp %14 : vector<2x128xf32>
    %cst_14 = arith.constant 1.000000e+00 : f32
    %16 = vector.broadcast %cst_14 : f32 to vector<2x128xf32>
    %17 = arith.addf %16, %15 : vector<2x128xf32>
    %18 = arith.divf %16, %17 : vector<2x128xf32>
    %19 = math.tanh %13 : vector<2x128xf32>
    %20 = vector.extract_strided_slice %18 {offsets = [0, 0], sizes = [2, 32], strides = [1, 1]} : vector<2x128xf32> to vector<2x32xf32>
    %21 = vector.extract_strided_slice %18 {offsets = [0, 32], sizes = [2, 32], strides = [1, 1]} : vector<2x128xf32> to vector<2x32xf32>
    %22 = vector.extract_strided_slice %19 {offsets = [0, 64], sizes = [2, 32], strides = [1, 1]} : vector<2x128xf32> to vector<2x32xf32>
    %23 = vector.extract_strided_slice %18 {offsets = [0, 96], sizes = [2, 32], strides = [1, 1]} : vector<2x128xf32> to vector<2x32xf32>
    %24 = arith.mulf %21, %9 : vector<2x32xf32>
    %25 = arith.mulf %20, %22 : vector<2x32xf32>
    %26 = arith.addf %24, %25 : vector<2x32xf32>
    %27 = math.tanh %26 : vector<2x32xf32>
    %28 = arith.mulf %23, %27 : vector<2x32xf32>
    %29 = arith.truncf %28 : vector<2x32xf32> to vector<2x32xbf16>
    %c0_15 = arith.constant 0 : index
    %c0_16 = arith.constant 0 : index
    %30 = vector.load %arg13[%c0_15, %c0_16] : memref<16x32xbf16, #tpu.memory_space<vmem>>, vector<2x32xbf16>
    tpu.vector_store %arg13[%c0_15, %c0_16], %29 {strides = array<i32>} : memref<16x32xbf16, #tpu.memory_space<vmem>>, vector<2x32xbf16>,
    %31 = arith.truncf %28 : vector<2x32xf32> to vector<2x32xbf16>
    %c2 = arith.constant 2 : index
    %c0_17 = arith.constant 0 : index
    %32 = vector.load %arg12[%c2, %c0_17] : memref<16x128xf32, #tpu.memory_space<vmem>>, vector<2x128xf32>
    %cst_18 = arith.constant dense<0.000000e+00> : vector<2x128xf32>
    %33 = tpu.matmul %31, %7, %cst_18 {dimension_numbers = #tpu.dot_dimension_numbers<[1], [0], [0], [1], [0, 0, 1, 1], [], []>} : vector<2x32xbf16>, vector<32x128xbf16>, vector<2x128xf32> -> vector<2x128xf32>
    %34 = arith.addf %32, %33 : vector<2x128xf32>
    %35 = arith.negf %34 : vector<2x128xf32>
    %36 = math.exp %35 : vector<2x128xf32>
    %cst_19 = arith.constant 1.000000e+00 : f32
    %37 = vector.broadcast %cst_19 : f32 to vector<2x128xf32>
    %38 = arith.addf %37, %36 : vector<2x128xf32>
    %39 = arith.divf %37, %38 : vector<2x128xf32>
    %40 = math.tanh %34 : vector<2x128xf32>
    %41 = vector.extract_strided_slice %39 {offsets = [0, 0], sizes = [2, 32], strides = [1, 1]} : vector<2x128xf32> to vector<2x32xf32>
    %42 = vector.extract_strided_slice %39 {offsets = [0, 32], sizes = [2, 32], strides = [1, 1]} : vector<2x128xf32> to vector<2x32xf32>
    %43 = vector.extract_strided_slice %40 {offsets = [0, 64], sizes = [2, 32], strides = [1, 1]} : vector<2x128xf32> to vector<2x32xf32>
    %44 = vector.extract_strided_slice %39 {offsets = [0, 96], sizes = [2, 32], strides = [1, 1]} : vector<2x128xf32> to vector<2x32xf32>
    %45 = arith.mulf %42, %26 : vector<2x32xf32>
    %46 = arith.mulf %41, %43 : vector<2x32xf32>
    %47 = arith.addf %45, %46 : vector<2x32xf32>
    %48 = math.tanh %47 : vector<2x32xf32>
    %49 = arith.mulf %44, %48 : vector<2x32xf32>
    %50 = arith.truncf %49 : vector<2x32xf32> to vector<2x32xbf16>
    %c2_20 = arith.constant 2 : index
    %c0_21 = arith.constant 0 : index
    %51 = vector.load %arg13[%c2_20, %c0_21] : memref<16x32xbf16, #tpu.memory_space<vmem>>, vector<2x32xbf16>
    tpu.vector_store %arg13[%c2_20, %c0_21], %50 {strides = array<i32>} : memref<16x32xbf16, #tpu.memory_space<vmem>>, vector<2x32xbf16>,
    %52 = arith.truncf %49 : vector<2x32xf32> to vector<2x32xbf16>
    %c4 = arith.constant 4 : index
    %c0_22 = arith.constant 0 : index
    %53 = vector.load %arg12[%c4, %c0_22] : memref<16x128xf32, #tpu.memory_space<vmem>>, vector<2x128xf32>
    %cst_23 = arith.constant dense<0.000000e+00> : vector<2x128xf32>
    %54 = tpu.matmul %52, %7, %cst_23 {dimension_numbers = #tpu.dot_dimension_numbers<[1], [0], [0], [1], [0, 0, 1, 1], [], []>} : vector<2x32xbf16>, vector<32x128xbf16>, vector<2x128xf32> -> vector<2x128xf32>
    %55 = arith.addf %53, %54 : vector<2x128xf32>
    %56 = arith.negf %55 : vector<2x128xf32>
    %57 = math.exp %56 : vector<2x128xf32>
    %cst_24 = arith.constant 1.000000e+00 : f32
    %58 = vector.broadcast %cst_24 : f32 to vector<2x128xf32>
    %59 = arith.addf %58, %57 : vector<2x128xf32>
    %60 = arith.divf %58, %59 : vector<2x128xf32>
    %61 = math.tanh %55 : vector<2x128xf32>
    %62 = vector.extract_strided_slice %60 {offsets = [0, 0], sizes = [2, 32], strides = [1, 1]} : vector<2x128xf32> to vector<2x32xf32>
    %63 = vector.extract_strided_slice %60 {offsets = [0, 32], sizes = [2, 32], strides = [1, 1]} : vector<2x128xf32> to vector<2x32xf32>
    %64 = vector.extract_strided_slice %61 {offsets = [0, 64], sizes = [2, 32], strides = [1, 1]} : vector<2x128xf32> to vector<2x32xf32>
    %65 = vector.extract_strided_slice %60 {offsets = [0, 96], sizes = [2, 32], strides = [1, 1]} : vector<2x128xf32> to vector<2x32xf32>
    %66 = arith.mulf %63, %47 : vector<2x32xf32>
    %67 = arith.mulf %62, %64 : vector<2x32xf32>
    %68 = arith.addf %66, %67 : vector<2x32xf32>
    %69 = math.tanh %68 : vector<2x32xf32>
    %70 = arith.mulf %65, %69 : vector<2x32xf32>
    %71 = arith.truncf %70 : vector<2x32xf32> to vector<2x32xbf16>
    %c4_25 = arith.constant 4 : index
    %c0_26 = arith.constant 0 : index
    %72 = vector.load %arg13[%c4_25, %c0_26] : memref<16x32xbf16, #tpu.memory_space<vmem>>, vector<2x32xbf16>
    tpu.vector_store %arg13[%c4_25, %c0_26], %71 {strides = array<i32>} : memref<16x32xbf16, #tpu.memory_space<vmem>>, vector<2x32xbf16>,
    %73 = arith.truncf %70 : vector<2x32xf32> to vector<2x32xbf16>
    %c6 = arith.constant 6 : index
    %c0_27 = arith.constant 0 : index
    %74 = vector.load %arg12[%c6, %c0_27] : memref<16x128xf32, #tpu.memory_space<vmem>>, vector<2x128xf32>
    %cst_28 = arith.constant dense<0.000000e+00> : vector<2x128xf32>
    %75 = tpu.matmul %73, %7, %cst_28 {dimension_numbers = #tpu.dot_dimension_numbers<[1], [0], [0], [1], [0, 0, 1, 1], [], []>} : vector<2x32xbf16>, vector<32x128xbf16>, vector<2x128xf32> -> vector<2x128xf32>
    %76 = arith.addf %74, %75 : vector<2x128xf32>
    %77 = arith.negf %76 : vector<2x128xf32>
    %78 = math.exp %77 : vector<2x128xf32>
    %cst_29 = arith.constant 1.000000e+00 : f32
    %79 = vector.broadcast %cst_29 : f32 to vector<2x128xf32>
    %80 = arith.addf %79, %78 : vector<2x128xf32>
    %81 = arith.divf %79, %80 : vector<2x128xf32>
    %82 = math.tanh %76 : vector<2x128xf32>
    %83 = vector.extract_strided_slice %81 {offsets = [0, 0], sizes = [2, 32], strides = [1, 1]} : vector<2x128xf32> to vector<2x32xf32>
    %84 = vector.extract_strided_slice %81 {offsets = [0, 32], sizes = [2, 32], strides = [1, 1]} : vector<2x128xf32> to vector<2x32xf32>
    %85 = vector.extract_strided_slice %82 {offsets = [0, 64], sizes = [2, 32], strides = [1, 1]} : vector<2x128xf32> to vector<2x32xf32>
    %86 = vector.extract_strided_slice %81 {offsets = [0, 96], sizes = [2, 32], strides = [1, 1]} : vector<2x128xf32> to vector<2x32xf32>
    %87 = arith.mulf %84, %68 : vector<2x32xf32>
    %88 = arith.mulf %83, %85 : vector<2x32xf32>
    %89 = arith.addf %87, %88 : vector<2x32xf32>
    %90 = math.tanh %89 : vector<2x32xf32>
    %91 = arith.mulf %86, %90 : vector<2x32xf32>
    %92 = arith.truncf %91 : vector<2x32xf32> to vector<2x32xbf16>
    %c6_30 = arith.constant 6 : index
    %c0_31 = arith.constant 0 : index
    %93 = vector.load %arg13[%c6_30, %c0_31] : memref<16x32xbf16, #tpu.memory_space<vmem>>, vector<2x32xbf16>
    tpu.vector_store %arg13[%c6_30, %c0_31], %92 {strides = array<i32>} : memref<16x32xbf16, #tpu.memory_space<vmem>>, vector<2x32xbf16>,
    %94 = arith.truncf %91 : vector<2x32xf32> to vector<2x32xbf16>
    %c8 = arith.constant 8 : index
    %c0_32 = arith.constant 0 : index
    %95 = vector.load %arg12[%c8, %c0_32] : memref<16x128xf32, #tpu.memory_space<vmem>>, vector<2x128xf32>
    %cst_33 = arith.constant dense<0.000000e+00> : vector<2x128xf32>
    %96 = tpu.matmul %94, %7, %cst_33 {dimension_numbers = #tpu.dot_dimension_numbers<[1], [0], [0], [1], [0, 0, 1, 1], [], []>} : vector<2x32xbf16>, vector<32x128xbf16>, vector<2x128xf32> -> vector<2x128xf32>
    %97 = arith.addf %95, %96 : vector<2x128xf32>
    %98 = arith.negf %97 : vector<2x128xf32>
    %99 = math.exp %98 : vector<2x128xf32>
    %cst_34 = arith.constant 1.000000e+00 : f32
    %100 = vector.broadcast %cst_34 : f32 to vector<2x128xf32>
    %101 = arith.addf %100, %99 : vector<2x128xf32>
    %102 = arith.divf %100, %101 : vector<2x128xf32>
    %103 = math.tanh %97 : vector<2x128xf32>
    %104 = vector.extract_strided_slice %102 {offsets = [0, 0], sizes = [2, 32], strides = [1, 1]} : vector<2x128xf32> to vector<2x32xf32>
    %105 = vector.extract_strided_slice %102 {offsets = [0, 32], sizes = [2, 32], strides = [1, 1]} : vector<2x128xf32> to vector<2x32xf32>
    %106 = vector.extract_strided_slice %103 {offsets = [0, 64], sizes = [2, 32], strides = [1, 1]} : vector<2x128xf32> to vector<2x32xf32>
    %107 = vector.extract_strided_slice %102 {offsets = [0, 96], sizes = [2, 32], strides = [1, 1]} : vector<2x128xf32> to vector<2x32xf32>
    %108 = arith.mulf %105, %89 : vector<2x32xf32>
    %109 = arith.mulf %104, %106 : vector<2x32xf32>
    %110 = arith.addf %108, %109 : vector<2x32xf32>
    %111 = math.tanh %110 : vector<2x32xf32>
    %112 = arith.mulf %107, %111 : vector<2x32xf32>
    %113 = arith.truncf %112 : vector<2x32xf32> to vector<2x32xbf16>
    %c8_35 = arith.constant 8 : index
    %c0_36 = arith.constant 0 : index
    %114 = vector.load %arg13[%c8_35, %c0_36] : memref<16x32xbf16, #tpu.memory_space<vmem>>, vector<2x32xbf16>
    tpu.vector_store %arg13[%c8_35, %c0_36], %113 {strides = array<i32>} : memref<16x32xbf16, #tpu.memory_space<vmem>>, vector<2x32xbf16>,
    %115 = arith.truncf %112 : vector<2x32xf32> to vector<2x32xbf16>
    %c10 = arith.constant 10 : index
    %c0_37 = arith.constant 0 : index
    %116 = vector.load %arg12[%c10, %c0_37] : memref<16x128xf32, #tpu.memory_space<vmem>>, vector<2x128xf32>
    %cst_38 = arith.constant dense<0.000000e+00> : vector<2x128xf32>
    %117 = tpu.matmul %115, %7, %cst_38 {dimension_numbers = #tpu.dot_dimension_numbers<[1], [0], [0], [1], [0, 0, 1, 1], [], []>} : vector<2x32xbf16>, vector<32x128xbf16>, vector<2x128xf32> -> vector<2x128xf32>
    %118 = arith.addf %116, %117 : vector<2x128xf32>
    %119 = arith.negf %118 : vector<2x128xf32>
    %120 = math.exp %119 : vector<2x128xf32>
    %cst_39 = arith.constant 1.000000e+00 : f32
    %121 = vector.broadcast %cst_39 : f32 to vector<2x128xf32>
    %122 = arith.addf %121, %120 : vector<2x128xf32>
    %123 = arith.divf %121, %122 : vector<2x128xf32>
    %124 = math.tanh %118 : vector<2x128xf32>
    %125 = vector.extract_strided_slice %123 {offsets = [0, 0], sizes = [2, 32], strides = [1, 1]} : vector<2x128xf32> to vector<2x32xf32>
    %126 = vector.extract_strided_slice %123 {offsets = [0, 32], sizes = [2, 32], strides = [1, 1]} : vector<2x128xf32> to vector<2x32xf32>
    %127 = vector.extract_strided_slice %124 {offsets = [0, 64], sizes = [2, 32], strides = [1, 1]} : vector<2x128xf32> to vector<2x32xf32>
    %128 = vector.extract_strided_slice %123 {offsets = [0, 96], sizes = [2, 32], strides = [1, 1]} : vector<2x128xf32> to vector<2x32xf32>
    %129 = arith.mulf %126, %110 : vector<2x32xf32>
    %130 = arith.mulf %125, %127 : vector<2x32xf32>
    %131 = arith.addf %129, %130 : vector<2x32xf32>
    %132 = math.tanh %131 : vector<2x32xf32>
    %133 = arith.mulf %128, %132 : vector<2x32xf32>
    %134 = arith.truncf %133 : vector<2x32xf32> to vector<2x32xbf16>
    %c10_40 = arith.constant 10 : index
    %c0_41 = arith.constant 0 : index
    %135 = vector.load %arg13[%c10_40, %c0_41] : memref<16x32xbf16, #tpu.memory_space<vmem>>, vector<2x32xbf16>
    tpu.vector_store %arg13[%c10_40, %c0_41], %134 {strides = array<i32>} : memref<16x32xbf16, #tpu.memory_space<vmem>>, vector<2x32xbf16>,
    %136 = arith.truncf %133 : vector<2x32xf32> to vector<2x32xbf16>
    %c12 = arith.constant 12 : index
    %c0_42 = arith.constant 0 : index
    %137 = vector.load %arg12[%c12, %c0_42] : memref<16x128xf32, #tpu.memory_space<vmem>>, vector<2x128xf32>
    %cst_43 = arith.constant dense<0.000000e+00> : vector<2x128xf32>
    %138 = tpu.matmul %136, %7, %cst_43 {dimension_numbers = #tpu.dot_dimension_numbers<[1], [0], [0], [1], [0, 0, 1, 1], [], []>} : vector<2x32xbf16>, vector<32x128xbf16>, vector<2x128xf32> -> vector<2x128xf32>
    %139 = arith.addf %137, %138 : vector<2x128xf32>
    %140 = arith.negf %139 : vector<2x128xf32>
    %141 = math.exp %140 : vector<2x128xf32>
    %cst_44 = arith.constant 1.000000e+00 : f32
    %142 = vector.broadcast %cst_44 : f32 to vector<2x128xf32>
    %143 = arith.addf %142, %141 : vector<2x128xf32>
    %144 = arith.divf %142, %143 : vector<2x128xf32>
    %145 = math.tanh %139 : vector<2x128xf32>
    %146 = vector.extract_strided_slice %144 {offsets = [0, 0], sizes = [2, 32], strides = [1, 1]} : vector<2x128xf32> to vector<2x32xf32>
    %147 = vector.extract_strided_slice %144 {offsets = [0, 32], sizes = [2, 32], strides = [1, 1]} : vector<2x128xf32> to vector<2x32xf32>
    %148 = vector.extract_strided_slice %145 {offsets = [0, 64], sizes = [2, 32], strides = [1, 1]} : vector<2x128xf32> to vector<2x32xf32>
    %149 = vector.extract_strided_slice %144 {offsets = [0, 96], sizes = [2, 32], strides = [1, 1]} : vector<2x128xf32> to vector<2x32xf32>
    %150 = arith.mulf %147, %131 : vector<2x32xf32>
    %151 = arith.mulf %146, %148 : vector<2x32xf32>
    %152 = arith.addf %150, %151 : vector<2x32xf32>
    %153 = math.tanh %152 : vector<2x32xf32>
    %154 = arith.mulf %149, %153 : vector<2x32xf32>
    %155 = arith.truncf %154 : vector<2x32xf32> to vector<2x32xbf16>
    %c12_45 = arith.constant 12 : index
    %c0_46 = arith.constant 0 : index
    %156 = vector.load %arg13[%c12_45, %c0_46] : memref<16x32xbf16, #tpu.memory_space<vmem>>, vector<2x32xbf16>
    tpu.vector_store %arg13[%c12_45, %c0_46], %155 {strides = array<i32>} : memref<16x32xbf16, #tpu.memory_space<vmem>>, vector<2x32xbf16>,
    %157 = arith.truncf %154 : vector<2x32xf32> to vector<2x32xbf16>
    %c14 = arith.constant 14 : index
    %c0_47 = arith.constant 0 : index
    %158 = vector.load %arg12[%c14, %c0_47] : memref<16x128xf32, #tpu.memory_space<vmem>>, vector<2x128xf32>
    %cst_48 = arith.constant dense<0.000000e+00> : vector<2x128xf32>
    %159 = tpu.matmul %157, %7, %cst_48 {dimension_numbers = #tpu.dot_dimension_numbers<[1], [0], [0], [1], [0, 0, 1, 1], [], []>} : vector<2x32xbf16>, vector<32x128xbf16>, vector<2x128xf32> -> vector<2x128xf32>
    %160 = arith.addf %158, %159 : vector<2x128xf32>
    %161 = arith.negf %160 : vector<2x128xf32>
    %162 = math.exp %161 : vector<2x128xf32>
    %cst_49 = arith.constant 1.000000e+00 : f32
    %163 = vector.broadcast %cst_49 : f32 to vector<2x128xf32>
    %164 = arith.addf %163, %162 : vector<2x128xf32>
    %165 = arith.divf %163, %164 : vector<2x128xf32>
    %166 = math.tanh %160 : vector<2x128xf32>
    %167 = vector.extract_strided_slice %165 {offsets = [0, 0], sizes = [2, 32], strides = [1, 1]} : vector<2x128xf32> to vector<2x32xf32>
    %168 = vector.extract_strided_slice %165 {offsets = [0, 32], sizes = [2, 32], strides = [1, 1]} : vector<2x128xf32> to vector<2x32xf32>
    %169 = vector.extract_strided_slice %166 {offsets = [0, 64], sizes = [2, 32], strides = [1, 1]} : vector<2x128xf32> to vector<2x32xf32>
    %170 = vector.extract_strided_slice %165 {offsets = [0, 96], sizes = [2, 32], strides = [1, 1]} : vector<2x128xf32> to vector<2x32xf32>
    %171 = arith.mulf %168, %152 : vector<2x32xf32>
    %172 = arith.mulf %167, %169 : vector<2x32xf32>
    %173 = arith.addf %171, %172 : vector<2x32xf32>
    %174 = math.tanh %173 : vector<2x32xf32>
    %175 = arith.mulf %170, %174 : vector<2x32xf32>
    %176 = arith.truncf %175 : vector<2x32xf32> to vector<2x32xbf16>
    %c14_50 = arith.constant 14 : index
    %c0_51 = arith.constant 0 : index
    %177 = vector.load %arg13[%c14_50, %c0_51] : memref<16x32xbf16, #tpu.memory_space<vmem>>, vector<2x32xbf16>
    tpu.vector_store %arg13[%c14_50, %c0_51], %176 {strides = array<i32>} : memref<16x32xbf16, #tpu.memory_space<vmem>>, vector<2x32xbf16>,
    %c0_52 = arith.constant 0 : index
    %c0_53 = arith.constant 0 : index
    %178 = vector.load %arg13[%c0_52, %c0_53] : memref<16x32xbf16, #tpu.memory_space<vmem>>, vector<16x32xbf16>
    %c0_54 = arith.constant 0 : index
    %c0_55 = arith.constant 0 : index
    %179 = vector.load %arg4[%c0_54, %c0_55] : memref<32x128xbf16, #tpu.memory_space<vmem>>, vector<32x128xbf16>
    %cst_56 = arith.constant dense<0.000000e+00> : vector<16x128xf32>
    %180 = tpu.matmul %178, %179, %cst_56 {dimension_numbers = #tpu.dot_dimension_numbers<[1], [0], [0], [1], [0, 0, 1, 1], [], []>} : vector<16x32xbf16>, vector<32x128xbf16>, vector<16x128xf32> -> vector<16x128xf32>
    %c0_57 = arith.constant 0 : index
    %c0_58 = arith.constant 0 : index
    %181 = vector.load %arg6[%c0_57, %c0_58] : memref<1x128xf32, #tpu.memory_space<vmem>>, vector<1x128xf32>
    %182 = vector.broadcast %181 : vector<1x128xf32> to vector<16x128xf32>
    %183 = arith.addf %180, %182 : vector<16x128xf32>
    %c0_59 = arith.constant 0 : index
    %c0_60 = arith.constant 0 : index
    %184 = vector.load %arg12[%c0_59, %c0_60] : memref<16x128xf32, #tpu.memory_space<vmem>>, vector<16x128xf32>
    tpu.vector_store %arg12[%c0_59, %c0_60], %183 {strides = array<i32>} : memref<16x128xf32, #tpu.memory_space<vmem>>, vector<16x128xf32>,
    %c0_61 = arith.constant 0 : index
    %c0_62 = arith.constant 0 : index
    %185 = vector.load %arg5[%c0_61, %c0_62] : memref<32x128xbf16, #tpu.memory_space<vmem>>, vector<32x128xbf16>
    %cst_63 = arith.constant 0.000000e+00 : f32
    %186 = vector.broadcast %cst_63 : f32 to vector<2x32xf32>
    %cst_64 = arith.constant 0.000000e+00 : f32
    %187 = vector.broadcast %cst_64 : f32 to vector<2x32xf32>
    %188 = arith.truncf %186 : vector<2x32xf32> to vector<2x32xbf16>
    %c0_65 = arith.constant 0 : index
    %c0_66 = arith.constant 0 : index
    %189 = vector.load %arg12[%c0_65, %c0_66] : memref<16x128xf32, #tpu.memory_space<vmem>>, vector<2x128xf32>
    %cst_67 = arith.constant dense<0.000000e+00> : vector<2x128xf32>
    %190 = tpu.matmul %188, %185, %cst_67 {dimension_numbers = #tpu.dot_dimension_numbers<[1], [0], [0], [1], [0, 0, 1, 1], [], []>} : vector<2x32xbf16>, vector<32x128xbf16>, vector<2x128xf32> -> vector<2x128xf32>
    %191 = arith.addf %189, %190 : vector<2x128xf32>
    %192 = arith.negf %191 : vector<2x128xf32>
    %193 = math.exp %192 : vector<2x128xf32>
    %cst_68 = arith.constant 1.000000e+00 : f32
    %194 = vector.broadcast %cst_68 : f32 to vector<2x128xf32>
    %195 = arith.addf %194, %193 : vector<2x128xf32>
    %196 = arith.divf %194, %195 : vector<2x128xf32>
    %197 = math.tanh %191 : vector<2x128xf32>
    %198 = vector.extract_strided_slice %196 {offsets = [0, 0], sizes = [2, 32], strides = [1, 1]} : vector<2x128xf32> to vector<2x32xf32>
    %199 = vector.extract_strided_slice %196 {offsets = [0, 32], sizes = [2, 32], strides = [1, 1]} : vector<2x128xf32> to vector<2x32xf32>
    %200 = vector.extract_strided_slice %197 {offsets = [0, 64], sizes = [2, 32], strides = [1, 1]} : vector<2x128xf32> to vector<2x32xf32>
    %201 = vector.extract_strided_slice %196 {offsets = [0, 96], sizes = [2, 32], strides = [1, 1]} : vector<2x128xf32> to vector<2x32xf32>
    %202 = arith.mulf %199, %187 : vector<2x32xf32>
    %203 = arith.mulf %198, %200 : vector<2x32xf32>
    %204 = arith.addf %202, %203 : vector<2x32xf32>
    %205 = math.tanh %204 : vector<2x32xf32>
    %206 = arith.mulf %201, %205 : vector<2x32xf32>
    %207 = arith.truncf %206 : vector<2x32xf32> to vector<2x32xbf16>
    %c2_69 = arith.constant 2 : index
    %c0_70 = arith.constant 0 : index
    %208 = vector.load %arg12[%c2_69, %c0_70] : memref<16x128xf32, #tpu.memory_space<vmem>>, vector<2x128xf32>
    %cst_71 = arith.constant dense<0.000000e+00> : vector<2x128xf32>
    %209 = tpu.matmul %207, %185, %cst_71 {dimension_numbers = #tpu.dot_dimension_numbers<[1], [0], [0], [1], [0, 0, 1, 1], [], []>} : vector<2x32xbf16>, vector<32x128xbf16>, vector<2x128xf32> -> vector<2x128xf32>
    %210 = arith.addf %208, %209 : vector<2x128xf32>
    %211 = arith.negf %210 : vector<2x128xf32>
    %212 = math.exp %211 : vector<2x128xf32>
    %cst_72 = arith.constant 1.000000e+00 : f32
    %213 = vector.broadcast %cst_72 : f32 to vector<2x128xf32>
    %214 = arith.addf %213, %212 : vector<2x128xf32>
    %215 = arith.divf %213, %214 : vector<2x128xf32>
    %216 = math.tanh %210 : vector<2x128xf32>
    %217 = vector.extract_strided_slice %215 {offsets = [0, 0], sizes = [2, 32], strides = [1, 1]} : vector<2x128xf32> to vector<2x32xf32>
    %218 = vector.extract_strided_slice %215 {offsets = [0, 32], sizes = [2, 32], strides = [1, 1]} : vector<2x128xf32> to vector<2x32xf32>
    %219 = vector.extract_strided_slice %216 {offsets = [0, 64], sizes = [2, 32], strides = [1, 1]} : vector<2x128xf32> to vector<2x32xf32>
    %220 = vector.extract_strided_slice %215 {offsets = [0, 96], sizes = [2, 32], strides = [1, 1]} : vector<2x128xf32> to vector<2x32xf32>
    %221 = arith.mulf %218, %204 : vector<2x32xf32>
    %222 = arith.mulf %217, %219 : vector<2x32xf32>
    %223 = arith.addf %221, %222 : vector<2x32xf32>
    %224 = math.tanh %223 : vector<2x32xf32>
    %225 = arith.mulf %220, %224 : vector<2x32xf32>
    %226 = arith.truncf %225 : vector<2x32xf32> to vector<2x32xbf16>
    %c4_73 = arith.constant 4 : index
    %c0_74 = arith.constant 0 : index
    %227 = vector.load %arg12[%c4_73, %c0_74] : memref<16x128xf32, #tpu.memory_space<vmem>>, vector<2x128xf32>
    %cst_75 = arith.constant dense<0.000000e+00> : vector<2x128xf32>
    %228 = tpu.matmul %226, %185, %cst_75 {dimension_numbers = #tpu.dot_dimension_numbers<[1], [0], [0], [1], [0, 0, 1, 1], [], []>} : vector<2x32xbf16>, vector<32x128xbf16>, vector<2x128xf32> -> vector<2x128xf32>
    %229 = arith.addf %227, %228 : vector<2x128xf32>
    %230 = arith.negf %229 : vector<2x128xf32>
    %231 = math.exp %230 : vector<2x128xf32>
    %cst_76 = arith.constant 1.000000e+00 : f32
    %232 = vector.broadcast %cst_76 : f32 to vector<2x128xf32>
    %233 = arith.addf %232, %231 : vector<2x128xf32>
    %234 = arith.divf %232, %233 : vector<2x128xf32>
    %235 = math.tanh %229 : vector<2x128xf32>
    %236 = vector.extract_strided_slice %234 {offsets = [0, 0], sizes = [2, 32], strides = [1, 1]} : vector<2x128xf32> to vector<2x32xf32>
    %237 = vector.extract_strided_slice %234 {offsets = [0, 32], sizes = [2, 32], strides = [1, 1]} : vector<2x128xf32> to vector<2x32xf32>
    %238 = vector.extract_strided_slice %235 {offsets = [0, 64], sizes = [2, 32], strides = [1, 1]} : vector<2x128xf32> to vector<2x32xf32>
    %239 = vector.extract_strided_slice %234 {offsets = [0, 96], sizes = [2, 32], strides = [1, 1]} : vector<2x128xf32> to vector<2x32xf32>
    %240 = arith.mulf %237, %223 : vector<2x32xf32>
    %241 = arith.mulf %236, %238 : vector<2x32xf32>
    %242 = arith.addf %240, %241 : vector<2x32xf32>
    %243 = math.tanh %242 : vector<2x32xf32>
    %244 = arith.mulf %239, %243 : vector<2x32xf32>
    %245 = arith.truncf %244 : vector<2x32xf32> to vector<2x32xbf16>
    %c6_77 = arith.constant 6 : index
    %c0_78 = arith.constant 0 : index
    %246 = vector.load %arg12[%c6_77, %c0_78] : memref<16x128xf32, #tpu.memory_space<vmem>>, vector<2x128xf32>
    %cst_79 = arith.constant dense<0.000000e+00> : vector<2x128xf32>
    %247 = tpu.matmul %245, %185, %cst_79 {dimension_numbers = #tpu.dot_dimension_numbers<[1], [0], [0], [1], [0, 0, 1, 1], [], []>} : vector<2x32xbf16>, vector<32x128xbf16>, vector<2x128xf32> -> vector<2x128xf32>
    %248 = arith.addf %246, %247 : vector<2x128xf32>
    %249 = arith.negf %248 : vector<2x128xf32>
    %250 = math.exp %249 : vector<2x128xf32>
    %cst_80 = arith.constant 1.000000e+00 : f32
    %251 = vector.broadcast %cst_80 : f32 to vector<2x128xf32>
    %252 = arith.addf %251, %250 : vector<2x128xf32>
    %253 = arith.divf %251, %252 : vector<2x128xf32>
    %254 = math.tanh %248 : vector<2x128xf32>
    %255 = vector.extract_strided_slice %253 {offsets = [0, 0], sizes = [2, 32], strides = [1, 1]} : vector<2x128xf32> to vector<2x32xf32>
    %256 = vector.extract_strided_slice %253 {offsets = [0, 32], sizes = [2, 32], strides = [1, 1]} : vector<2x128xf32> to vector<2x32xf32>
    %257 = vector.extract_strided_slice %254 {offsets = [0, 64], sizes = [2, 32], strides = [1, 1]} : vector<2x128xf32> to vector<2x32xf32>
    %258 = vector.extract_strided_slice %253 {offsets = [0, 96], sizes = [2, 32], strides = [1, 1]} : vector<2x128xf32> to vector<2x32xf32>
    %259 = arith.mulf %256, %242 : vector<2x32xf32>
    %260 = arith.mulf %255, %257 : vector<2x32xf32>
    %261 = arith.addf %259, %260 : vector<2x32xf32>
    %262 = math.tanh %261 : vector<2x32xf32>
    %263 = arith.mulf %258, %262 : vector<2x32xf32>
    %264 = arith.truncf %263 : vector<2x32xf32> to vector<2x32xbf16>
    %c8_81 = arith.constant 8 : index
    %c0_82 = arith.constant 0 : index
    %265 = vector.load %arg12[%c8_81, %c0_82] : memref<16x128xf32, #tpu.memory_space<vmem>>, vector<2x128xf32>
    %cst_83 = arith.constant dense<0.000000e+00> : vector<2x128xf32>
    %266 = tpu.matmul %264, %185, %cst_83 {dimension_numbers = #tpu.dot_dimension_numbers<[1], [0], [0], [1], [0, 0, 1, 1], [], []>} : vector<2x32xbf16>, vector<32x128xbf16>, vector<2x128xf32> -> vector<2x128xf32>
    %267 = arith.addf %265, %266 : vector<2x128xf32>
    %268 = arith.negf %267 : vector<2x128xf32>
    %269 = math.exp %268 : vector<2x128xf32>
    %cst_84 = arith.constant 1.000000e+00 : f32
    %270 = vector.broadcast %cst_84 : f32 to vector<2x128xf32>
    %271 = arith.addf %270, %269 : vector<2x128xf32>
    %272 = arith.divf %270, %271 : vector<2x128xf32>
    %273 = math.tanh %267 : vector<2x128xf32>
    %274 = vector.extract_strided_slice %272 {offsets = [0, 0], sizes = [2, 32], strides = [1, 1]} : vector<2x128xf32> to vector<2x32xf32>
    %275 = vector.extract_strided_slice %272 {offsets = [0, 32], sizes = [2, 32], strides = [1, 1]} : vector<2x128xf32> to vector<2x32xf32>
    %276 = vector.extract_strided_slice %273 {offsets = [0, 64], sizes = [2, 32], strides = [1, 1]} : vector<2x128xf32> to vector<2x32xf32>
    %277 = vector.extract_strided_slice %272 {offsets = [0, 96], sizes = [2, 32], strides = [1, 1]} : vector<2x128xf32> to vector<2x32xf32>
    %278 = arith.mulf %275, %261 : vector<2x32xf32>
    %279 = arith.mulf %274, %276 : vector<2x32xf32>
    %280 = arith.addf %278, %279 : vector<2x32xf32>
    %281 = math.tanh %280 : vector<2x32xf32>
    %282 = arith.mulf %277, %281 : vector<2x32xf32>
    %283 = arith.truncf %282 : vector<2x32xf32> to vector<2x32xbf16>
    %c10_85 = arith.constant 10 : index
    %c0_86 = arith.constant 0 : index
    %284 = vector.load %arg12[%c10_85, %c0_86] : memref<16x128xf32, #tpu.memory_space<vmem>>, vector<2x128xf32>
    %cst_87 = arith.constant dense<0.000000e+00> : vector<2x128xf32>
    %285 = tpu.matmul %283, %185, %cst_87 {dimension_numbers = #tpu.dot_dimension_numbers<[1], [0], [0], [1], [0, 0, 1, 1], [], []>} : vector<2x32xbf16>, vector<32x128xbf16>, vector<2x128xf32> -> vector<2x128xf32>
    %286 = arith.addf %284, %285 : vector<2x128xf32>
    %287 = arith.negf %286 : vector<2x128xf32>
    %288 = math.exp %287 : vector<2x128xf32>
    %cst_88 = arith.constant 1.000000e+00 : f32
    %289 = vector.broadcast %cst_88 : f32 to vector<2x128xf32>
    %290 = arith.addf %289, %288 : vector<2x128xf32>
    %291 = arith.divf %289, %290 : vector<2x128xf32>
    %292 = math.tanh %286 : vector<2x128xf32>
    %293 = vector.extract_strided_slice %291 {offsets = [0, 0], sizes = [2, 32], strides = [1, 1]} : vector<2x128xf32> to vector<2x32xf32>
    %294 = vector.extract_strided_slice %291 {offsets = [0, 32], sizes = [2, 32], strides = [1, 1]} : vector<2x128xf32> to vector<2x32xf32>
    %295 = vector.extract_strided_slice %292 {offsets = [0, 64], sizes = [2, 32], strides = [1, 1]} : vector<2x128xf32> to vector<2x32xf32>
    %296 = vector.extract_strided_slice %291 {offsets = [0, 96], sizes = [2, 32], strides = [1, 1]} : vector<2x128xf32> to vector<2x32xf32>
    %297 = arith.mulf %294, %280 : vector<2x32xf32>
    %298 = arith.mulf %293, %295 : vector<2x32xf32>
    %299 = arith.addf %297, %298 : vector<2x32xf32>
    %300 = math.tanh %299 : vector<2x32xf32>
    %301 = arith.mulf %296, %300 : vector<2x32xf32>
    %302 = arith.truncf %301 : vector<2x32xf32> to vector<2x32xbf16>
    %c12_89 = arith.constant 12 : index
    %c0_90 = arith.constant 0 : index
    %303 = vector.load %arg12[%c12_89, %c0_90] : memref<16x128xf32, #tpu.memory_space<vmem>>, vector<2x128xf32>
    %cst_91 = arith.constant dense<0.000000e+00> : vector<2x128xf32>
    %304 = tpu.matmul %302, %185, %cst_91 {dimension_numbers = #tpu.dot_dimension_numbers<[1], [0], [0], [1], [0, 0, 1, 1], [], []>} : vector<2x32xbf16>, vector<32x128xbf16>, vector<2x128xf32> -> vector<2x128xf32>
    %305 = arith.addf %303, %304 : vector<2x128xf32>
    %306 = arith.negf %305 : vector<2x128xf32>
    %307 = math.exp %306 : vector<2x128xf32>
    %cst_92 = arith.constant 1.000000e+00 : f32
    %308 = vector.broadcast %cst_92 : f32 to vector<2x128xf32>
    %309 = arith.addf %308, %307 : vector<2x128xf32>
    %310 = arith.divf %308, %309 : vector<2x128xf32>
    %311 = math.tanh %305 : vector<2x128xf32>
    %312 = vector.extract_strided_slice %310 {offsets = [0, 0], sizes = [2, 32], strides = [1, 1]} : vector<2x128xf32> to vector<2x32xf32>
    %313 = vector.extract_strided_slice %310 {offsets = [0, 32], sizes = [2, 32], strides = [1, 1]} : vector<2x128xf32> to vector<2x32xf32>
    %314 = vector.extract_strided_slice %311 {offsets = [0, 64], sizes = [2, 32], strides = [1, 1]} : vector<2x128xf32> to vector<2x32xf32>
    %315 = vector.extract_strided_slice %310 {offsets = [0, 96], sizes = [2, 32], strides = [1, 1]} : vector<2x128xf32> to vector<2x32xf32>
    %316 = arith.mulf %313, %299 : vector<2x32xf32>
    %317 = arith.mulf %312, %314 : vector<2x32xf32>
    %318 = arith.addf %316, %317 : vector<2x32xf32>
    %319 = math.tanh %318 : vector<2x32xf32>
    %320 = arith.mulf %315, %319 : vector<2x32xf32>
    %321 = arith.truncf %320 : vector<2x32xf32> to vector<2x32xbf16>
    %c14_93 = arith.constant 14 : index
    %c0_94 = arith.constant 0 : index
    %322 = vector.load %arg12[%c14_93, %c0_94] : memref<16x128xf32, #tpu.memory_space<vmem>>, vector<2x128xf32>
    %cst_95 = arith.constant dense<0.000000e+00> : vector<2x128xf32>
    %323 = tpu.matmul %321, %185, %cst_95 {dimension_numbers = #tpu.dot_dimension_numbers<[1], [0], [0], [1], [0, 0, 1, 1], [], []>} : vector<2x32xbf16>, vector<32x128xbf16>, vector<2x128xf32> -> vector<2x128xf32>
    %324 = arith.addf %322, %323 : vector<2x128xf32>
    %325 = arith.negf %324 : vector<2x128xf32>
    %326 = math.exp %325 : vector<2x128xf32>
    %cst_96 = arith.constant 1.000000e+00 : f32
    %327 = vector.broadcast %cst_96 : f32 to vector<2x128xf32>
    %328 = arith.addf %327, %326 : vector<2x128xf32>
    %329 = arith.divf %327, %328 : vector<2x128xf32>
    %330 = math.tanh %324 : vector<2x128xf32>
    %331 = vector.extract_strided_slice %329 {offsets = [0, 0], sizes = [2, 32], strides = [1, 1]} : vector<2x128xf32> to vector<2x32xf32>
    %332 = vector.extract_strided_slice %329 {offsets = [0, 32], sizes = [2, 32], strides = [1, 1]} : vector<2x128xf32> to vector<2x32xf32>
    %333 = vector.extract_strided_slice %330 {offsets = [0, 64], sizes = [2, 32], strides = [1, 1]} : vector<2x128xf32> to vector<2x32xf32>
    %334 = vector.extract_strided_slice %329 {offsets = [0, 96], sizes = [2, 32], strides = [1, 1]} : vector<2x128xf32> to vector<2x32xf32>
    %335 = arith.mulf %332, %318 : vector<2x32xf32>
    %336 = arith.mulf %331, %333 : vector<2x32xf32>
    %337 = arith.addf %335, %336 : vector<2x32xf32>
    %338 = math.tanh %337 : vector<2x32xf32>
    %339 = arith.mulf %334, %338 : vector<2x32xf32>
    %340 = arith.truncf %339 : vector<2x32xf32> to vector<2x32xbf16>
    %c0_97 = arith.constant 0 : index
    %c0_98 = arith.constant 0 : index
    %341 = vector.load %arg7[%c0_97, %c0_98] : memref<32x128xbf16, #tpu.memory_space<vmem>>, vector<32x128xbf16>
    %cst_99 = arith.constant dense<0.000000e+00> : vector<2x128xf32>
    %342 = tpu.matmul %340, %341, %cst_99 {dimension_numbers = #tpu.dot_dimension_numbers<[1], [0], [0], [1], [0, 0, 1, 1], [], []>} : vector<2x32xbf16>, vector<32x128xbf16>, vector<2x128xf32> -> vector<2x128xf32>
    %c0_100 = arith.constant 0 : index
    %c0_101 = arith.constant 0 : index
    %343 = vector.load %arg8[%c0_100, %c0_101] : memref<1x128xf32, #tpu.memory_space<vmem>>, vector<1x128xf32>
    %344 = vector.broadcast %343 : vector<1x128xf32> to vector<2x128xf32>
    %345 = arith.addf %342, %344 : vector<2x128xf32>
    %cst_102 = arith.constant 0.000000e+00 : f32
    %346 = vector.broadcast %cst_102 : f32 to vector<2x128xf32>
    %347 = arith.maximumf %345, %346 : vector<2x128xf32>
    %348 = arith.truncf %347 : vector<2x128xf32> to vector<2x128xbf16>
    %c0_103 = arith.constant 0 : index
    %c0_104 = arith.constant 0 : index
    %349 = vector.load %arg9[%c0_103, %c0_104] : memref<128x4xbf16, #tpu.memory_space<vmem>>, vector<128x4xbf16>
    %cst_105 = arith.constant dense<0.000000e+00> : vector<2x4xf32>
    %350 = tpu.matmul %348, %349, %cst_105 {dimension_numbers = #tpu.dot_dimension_numbers<[1], [0], [0], [1], [0, 0, 1, 1], [], []>} : vector<2x128xbf16>, vector<128x4xbf16>, vector<2x4xf32> -> vector<2x4xf32>
    %c0_106 = arith.constant 0 : index
    %c0_107 = arith.constant 0 : index
    %351 = vector.load %arg10[%c0_106, %c0_107] : memref<1x4xf32, #tpu.memory_space<vmem>>, vector<1x4xf32>
    %352 = vector.broadcast %351 : vector<1x4xf32> to vector<2x4xf32>
    %353 = arith.addf %350, %352 : vector<2x4xf32>
    %c0_108 = arith.constant 0 : index
    %c0_109 = arith.constant 0 : index
    %354 = vector.load %arg11[%c0_108, %c0_109] : memref<2x4xf32, #tpu.memory_space<vmem>>, vector<2x4xf32>
    tpu.vector_store %arg11[%c0_108, %c0_109], %353 {strides = array<i32>} : memref<2x4xf32, #tpu.memory_space<vmem>>, vector<2x4xf32>,
    return
  }
}

</mosaic_0001>

<bundles_post_ra>
// kernel: tpu_custom_call.1
= control target key start
LH: loop header
LB: loop body
LE: loop exit
PB: predicated region body
PF: predicated region fallthrough
CT: control target
= control target key end

     0   :  { %16 = vsyncpa [#allocation5], 0  ;;  %s2560_s0 = inlined_call_operand.hbm [shape: bf16[16,16], index: 0, kind: input, shape index: {}]   ;;  %s2561_s1 = inlined_call_operand.hbm [shape: bf16[16,128], index: 1, kind: input, shape index: {}]   ;;  %s2562_s2 = inlined_call_operand.vmem [shape: bf16[32,128], index: 2, kind: input, shape index: {}]   ;;  %s2563_s3 = inlined_call_operand.vmem [shape: f32[1,128], index: 3, kind: input, shape index: {}]   ;;  %s2564_s4 = inlined_call_operand.vmem [shape: bf16[32,128], index: 4, kind: input, shape index: {}]   ;;  %s2565_s5 = inlined_call_operand.vmem [shape: bf16[32,128], index: 5, kind: input, shape index: {}]   ;;  %s2566_s6 = inlined_call_operand.vmem [shape: f32[1,128], index: 6, kind: input, shape index: {}]   ;;  %s2567_s7 = inlined_call_operand.vmem [shape: bf16[32,128], index: 7, kind: input, shape index: {}]   ;;  %s2568_s8 = inlined_call_operand.vmem [shape: f32[1,128], index: 8, kind: input, shape index: {}]   ;;  %s2569_s9 = inlined_call_operand.vmem [shape: bf16[128,4], index: 9, kind: input, shape index: {}]   ;;  %s2570_s10 = inlined_call_operand.vmem [shape: f32[1,4], index: 10, kind: input, shape index: {}]   ;;  %s2571_s11 = inlined_call_operand.hbm [shape: f32[2,4], index: 11, kind: output, shape index: {}]  }
   0x1   :  { %17 = vsyncpa [#allocation8], 0 }
   0x2   :  { %18 = vsyncpa [#allocation6], 0  ;;  %s2162_s17 = smov [#allocation4]   ;;  %s2090_s21 = scalar_lea.hbm %s2560_s0, 128 }
   0x3   :  { %s24_s18 = sshll.u32 %s2162_s17, 4  ;;  %p2091_p0 = scmp.ne.s32.totalorder %s2560_s0, %s2090_s21  ;;  %s25_s18 = int_to_ptr.vmem [resolvable:$true] %s24_s18 }
   0x4   :  { %p2094_p1 = scmp.lt.u32.totalorder %s2090_s21, %s2560_s0 }
   0x6   :  { %p2096_p2 = pnand %p2094_p1, %p2091_p0 }
   0x8   :  { %2099 = shalt.err (!%p2096_p2)
}
   0x9   :  { %s2100_s26 = scalar_lea.vmem %s25_s18, 128  ;;  %p2105_p4 = scmp.lt.s32.totalorder %s25_s18, %s25_s18 }
   0xa   :  { %p2101_p3 = scmp.ne.s32.totalorder %s25_s18, %s2100_s26  ;;  %p2106_p5 = scmp.lt.s32.totalorder %s2100_s26, %s2100_s26 }
   0xc   :  { %p2107_p6 = por %p2106_p5, %p2105_p4 }
   0xe   :  { %p2108_p7 = pnand %p2107_p6, %p2101_p3 }
  0x10   :  { %2111 = shalt.err (!%p2108_p7)
}
  0x11   :  { %s2163_s27 = smov 64   ;;  %s2164_s28 = smov 4  }
  0x12   :  { %30 = dma.hbm_to_vmem [thread:$0]  %s2560_s0, 128, %s25_s18, [#allocation5], %s2163_s27, %s2163_s27, %s2164_s28  }
  0x13   :  { %s2165_s12 = smov [#allocation7]   ;;  %s2112_s16 = scalar_lea.hbm %s2561_s1, 128 }
  0x14   :  { %s36_s13 = sshll.u32 %s2165_s12, 4  ;;  %p2113_p8 = scmp.ne.s32.totalorder %s2561_s1, %s2112_s16  ;;  %s37_s13 = int_to_ptr.vmem [resolvable:$true] %s36_s13 }
  0x15   :  { %p2116_p9 = scmp.lt.u32.totalorder %s2112_s16, %s2561_s1 }
  0x17   :  { %p2118_p10 = pnand %p2116_p9, %p2113_p8 }
  0x19   :  { %2121 = shalt.err (!%p2118_p10)
}
  0x1a   :  { %s2122_s22 = scalar_lea.vmem %s37_s13, 128  ;;  %p2127_p12 = scmp.lt.s32.totalorder %s37_s13, %s37_s13 }
  0x1b   :  { %p2123_p11 = scmp.ne.s32.totalorder %s37_s13, %s2122_s22  ;;  %p2128_p13 = scmp.lt.s32.totalorder %s2122_s22, %s2122_s22 }
  0x1d   :  { %p2129_p0 = por %p2128_p13, %p2127_p12 }
  0x1f   :  { %p2130_p1 = pnand %p2129_p0, %p2123_p11 }
  0x21   :  { %2133 = shalt.err (!%p2130_p1)
}
  0x22   :  { %42 = dma.hbm_to_vmem [thread:$0]  %s2561_s1, 128, %s37_s13, [#allocation8], %s2163_s27, %s2163_s27, %s2164_s28  }
  0x23   :  { %2156 = dma.done.wait [#allocation5], 128  }
  0x24   :  { %2157 = vsyncadd [#allocation5], 4294967168 }
  0x25   :  { %2158 = dma.done.wait [#allocation8], 128  }
  0x26   :  { %2159 = vsyncadd [#allocation8], 4294967168  ;;  %v2166_v0 = vmov 0.0   ;;  %vm2167_vm0 = vmmov 0   ;;  %v1944_v1 = vld [vmem:[#allocation7] sm:$0xff]   ;;  %v1945_v2 = vld [vmem:[#allocation4] sm:$0xff]  }
  0x27   :  { %1765 = vmatprep.subr.bf16.mxu0 %v2166_v0  ;;  %1767 = vmatprep.mubr.msk.bf16.mxu0 %vm2167_vm0, %v2166_v0  ;;  %vm90_vm1 = vcmask 130048   ;;  %v2268_v3 = vld [vmem:[%s2562_s2] sm:$0xff]   ;;  %v2274_v4 = vld [vmem:[%s2562_s2 + $0x8] sm:$0xff]   ;;  %v2168_v5 = vmov 0   ;;  %vm228_vm2 = vcmask 253952   ;;  %vm154_vm3 = vcmask 261120  }
  0x28   :  { %1803 = vmatprep.subr.bf16.mxu1 %v2166_v0  ;;  %1807 = vmatprep.mubr.msk.bf16.mxu1 %vm2167_vm0, %v2166_v0  ;;  %v1645_v6 = vld [vmem:[%s2563_s3] ss:$0 sm:$0xff]  ;;  %s2169_s3 = smov 32   ;;  %vm305_vm4 = vcmask 254977   ;;  %vm463_vm5 = vcmask 257027   ;;  %vm621_vm6 = vcmask 259077  }
  0x29   :  { %1766 = vmatpush3.bf16.msra.mxu0 %v1944_v1  ;;  %1804 = vmatpush3.bf16.msra.mxu1 %v2268_v3  ;;  %vm384_vm7 = vcmask 256002   ;;  %vm542_vm8 = vcmask 258052   ;;  %vm700_vm9 = vcmask 260102   ;;  %vm779_vm10 = vcmask 261127   ;;  %s2170_s16 = smov [#allocation9]  }
  0x2a   :  { %1771 = vmatprep.subr.bf16.mxu0 %v2166_v0  ;;  %1805 = vmatprep.subr.bf16.mxu1 %v2166_v0  ;;  %vm1627_vm11 = vcmask 25600  }
  0x2c   :  { %1768 = vmatmul.mubr.msk.bf16.vlgmr.msra.gmra.mrb[0].mxu0 %vm90_vm1, %v1945_v2 }
  0x2d   :  { %1772 = vmatpush3.bf16.msra.mxu0 %v2268_v3  ;;  %1775 = vmatprep.mubr.msk.bf16.mxu0 %vm2167_vm0, %v2166_v0 }
  0x2e   :  { %1773 = vmatprep.subr.bf16.mxu0 %v2166_v0  ;;  %1806 = vmatpush3.bf16.msra.mxu1 %v2274_v4 }
  0x2f   :  { %1819 = vmatprep.subr.bf16.mxu1 %v2166_v0 }
  0x31   :  { %1774 = vmatpush3.bf16.msra.mxu0 %v2274_v4 }
  0x32   :  { %1779 = vmatprep.subr.bf16.mxu0 %v2166_v0 }
  0x34   :  { %1776 = vmatmul.mubr.bf16.vlgmr.msra.gmra.mrb[4].mxu0 %v2168_v5 }
  0x35   :  { %1780 = vmatpush3.bf16.msra.mxu0 %v2268_v3  ;;  %1783 = vmatprep.mubr.msk.bf16.mxu0 %vm2167_vm0, %v2166_v0 }
  0x36   :  { %1781 = vmatprep.subr.bf16.mxu0 %v2166_v0 }
  0x39   :  { %1782 = vmatpush3.bf16.msra.mxu0 %v2274_v4 }
  0x3a   :  { %1787 = vmatprep.subr.bf16.mxu0 %v2166_v0 }
  0xff   :  { %v128_v7 = vpop.f32.mrb[0].mxu0 }
 0x100   :  { %v129_v8 = vadd.f32 %v1645_v6, %v128_v7  ;;  %v1769_v9 = vpop.f32.mrb[1].mxu0 }
 0x101   :  { %v131_v10 = vpop.f32.mrb[2].mxu0 }
 0x102   :  { %135 = vst [vmem:[#allocation2] sm:$0xff] %v129_v8  ;;  %v132_v11 = vadd.f32 %v1645_v6, %v131_v10  ;;  %v1770_v12 = vpop.f32.mrb[3].mxu0 }
 0x104   :  { %136 = vst [vmem:[#allocation2 + $0x8] sm:$0xff] %v132_v11 }
 0x107   :  { %v192_v13 = vpop.f32.mrb[4].mxu0 }
 0x108   :  { %v1777_v14 = vpop.f32.mrb[5].mxu0 }
 0x109   :  { %v141_v15 = vld [vmem:[#allocation2] sm:$0x3]  ;;  %v195_v16 = vpop.f32.mrb[6].mxu0  ;;  %v230_v34 = vld [vmem:[#allocation2 + $0x2] sm:$0x3] }
 0x10a   :  { %v198_v17 = vadd.f32 %v192_v13, %v141_v15  ;;  %v1778_v18 = vpop.f32.mrb[7].mxu0  ;;  %v307_v55 = vld [vmem:[#allocation2 + $0x4] sm:$0x3]  ;;  %v386_v16 = vld [vmem:[#allocation2 + $0x6] sm:$0x3] }
 0x10c   :  { %1962 = vtanh.f32 %v198_v17  ;;  %v1651_v20 = vmul.f32 -1.442695, %v198_v17 }
 0x10e   :  { %1964 = vpow2.f32 %v1651_v20 }
 0x116   :  { %v1963_v19 = vpop.eup %1962 }
 0x117   :  { %208 = vrot.lane.b32.xlu0 %v1963_v19, %s2163_s27 }
 0x118   :  { %v1965_v21 = vpop.eup %1964 }
 0x119   :  { %v202_v22 = vadd.f32 1.0, %v1965_v21 }
 0x11b   :  { %1966 = vrcp.f32 %v202_v22 }
 0x125   :  { %v1967_v23 = vpop.eup %1966 }
 0x126   :  { %v206_v26 = vmul.f32 0.0, %v1967_v23 }
 0x189   :  { %v209_v24 = vpop.permute.xlu0 %208 }
 0x18a   :  { %v211_v25 = vmul.f32 %v1967_v23, %v209_v24 }
 0x18c   :  { %213 = vrot.lane.b32.xlu0 %v211_v25, %s2169_s3 }
 0x1fe   :  { %v214_v27 = vpop.permute.xlu0 %213 }
 0x1ff   :  { %v216_v28 = vadd.f32 %v214_v27, %v206_v26 }
 0x201   :  { %1968 = vtanh.f32 %v216_v28 }
 0x20b   :  { %v1969_v29 = vpop.eup %1968 }
 0x20c   :  { %219 = vrot.lane.b32.xlu1 %v1969_v29, %s2163_s27 }
 0x27e   :  { %v220_v30 = vpop.permute.xlu1 %219 }
 0x27f   :  { %v222_v31 = vmul.f32 %v1967_v23, %v220_v30 }
 0x281   :  { %v223_v32 = vpack.c.bf16 %v222_v31, %v222_v31 }
 0x283   :  { %225 = vrot.lane.b32.xlu1 %v223_v32, %s2169_s3 }
 0x2f5   :  { %v226_v33 = vpop.permute.xlu1 %225 }
 0x2f6   :  { %229 = vst.msk [vmem:[#allocation3] sm:$0x1] %vm228_vm2, %v226_v33  ;;  %1784 = vmatmul.mubr.msk.bf16.vlgmr.msra.gmra.mrb[8].mxu0 %vm154_vm3, %v226_v33 }
 0x2f7   :  { %1788 = vmatpush3.bf16.msra.mxu0 %v2268_v3  ;;  %1791 = vmatprep.mubr.msk.bf16.mxu0 %vm2167_vm0, %v2166_v0 }
 0x2f8   :  { %1789 = vmatprep.subr.bf16.mxu0 %v2166_v0 }
 0x2fb   :  { %1790 = vmatpush3.bf16.msra.mxu0 %v2274_v4 }
 0x2fc   :  { %1795 = vmatprep.subr.bf16.mxu0 %v2166_v0 }
 0x3c9   :  { %v268_v35 = vpop.f32.mrb[8].mxu0 }
 0x3ca   :  { %v274_v36 = vadd.f32 %v268_v35, %v230_v34  ;;  %v1785_v37 = vpop.f32.mrb[9].mxu0 }
 0x3cb   :  { %v271_v38 = vpop.f32.mrb[10].mxu0  ;;  %v465_v37 = vld [vmem:[#allocation2 + $0x8] sm:$0x3] }
 0x3cc   :  { %1970 = vtanh.f32 %v274_v36  ;;  %v1786_v39 = vpop.f32.mrb[11].mxu0  ;;  %v1653_v41 = vmul.f32 -1.442695, %v274_v36 }
 0x3ce   :  { %1972 = vpow2.f32 %v1653_v41 }
 0x3d6   :  { %v1971_v40 = vpop.eup %1970 }
 0x3d7   :  { %284 = vrot.lane.b32.xlu0 %v1971_v40, %s2163_s27 }
 0x3d8   :  { %v1973_v42 = vpop.eup %1972 }
 0x3d9   :  { %v278_v43 = vadd.f32 1.0, %v1973_v42 }
 0x3db   :  { %1974 = vrcp.f32 %v278_v43 }
 0x3e5   :  { %v1975_v44 = vpop.eup %1974 }
 0x3e6   :  { %v282_v47 = vmul.f32 %v1975_v44, %v216_v28 }
 0x449   :  { %v285_v45 = vpop.permute.xlu0 %284 }
 0x44a   :  { %v287_v46 = vmul.f32 %v1975_v44, %v285_v45 }
 0x44c   :  { %289 = vrot.lane.b32.xlu1 %v287_v46, %s2169_s3 }
 0x4be   :  { %v290_v48 = vpop.permute.xlu1 %289 }
 0x4bf   :  { %v292_v49 = vadd.f32 %v290_v48, %v282_v47 }
 0x4c1   :  { %1976 = vtanh.f32 %v292_v49 }
 0x4cb   :  { %v1977_v50 = vpop.eup %1976 }
 0x4cc   :  { %295 = vrot.lane.b32.xlu0 %v1977_v50, %s2163_s27 }
 0x53e   :  { %v296_v51 = vpop.permute.xlu0 %295 }
 0x53f   :  { %v298_v52 = vmul.f32 %v1975_v44, %v296_v51 }
 0x541   :  { %v2310_v53 = vpack.c.bf16 %v298_v52, %v298_v52 }
 0x543   :  { %308 = vrot.lane.b32.xlu1 %v2310_v53, %s2169_s3 }
 0x5b5   :  { %v309_v54 = vpop.permute.xlu1 %308 }
 0x5b6   :  { %1792 = vmatmul.mubr.msk.bf16.vlgmr.msra.gmra.mrb[12].mxu0 %vm154_vm3, %v309_v54 }
 0x5b7   :  { %1796 = vmatpush3.bf16.msra.mxu0 %v2268_v3  ;;  %1799 = vmatprep.mubr.msk.bf16.mxu0 %vm2167_vm0, %v2166_v0 }
 0x5b8   :  { %1797 = vmatprep.subr.bf16.mxu0 %v2166_v0 }
 0x5bb   :  { %1798 = vmatpush3.bf16.msra.mxu0 %v2274_v4 }
 0x5bc   :  { %1811 = vmatprep.subr.bf16.mxu0 %v2166_v0 }
 0x689   :  { %v347_v56 = vpop.f32.mrb[12].mxu0 }
 0x68a   :  { %v353_v57 = vadd.f32 %v347_v56, %v307_v55  ;;  %v1793_v58 = vpop.f32.mrb[13].mxu0 }
 0x68b   :  { %v350_v59 = vpop.f32.mrb[14].mxu0 }
 0x68c   :  { %1978 = vtanh.f32 %v353_v57  ;;  %v1794_v60 = vpop.f32.mrb[15].mxu0  ;;  %v1655_v62 = vmul.f32 -1.442695, %v353_v57  ;;  %v544_v59 = vld [vmem:[#allocation2 + $0xa] sm:$0x3] }
 0x68e   :  { %1980 = vpow2.f32 %v1655_v62 }
 0x696   :  { %v1979_v61 = vpop.eup %1978 }
 0x697   :  { %363 = vrot.lane.b32.xlu0 %v1979_v61, %s2163_s27 }
 0x698   :  { %v1981_v63 = vpop.eup %1980 }
 0x699   :  { %v357_v1 = vadd.f32 1.0, %v1981_v63 }
 0x69b   :  { %1982 = vrcp.f32 %v357_v1 }
 0x6a5   :  { %v1983_v2 = vpop.eup %1982 }
 0x6a6   :  { %v361_v8 = vmul.f32 %v1983_v2, %v292_v49 }
 0x709   :  { %v364_v6 = vpop.permute.xlu0 %363 }
 0x70a   :  { %v366_v7 = vmul.f32 %v1983_v2, %v364_v6 }
 0x70c   :  { %368 = vrot.lane.b32.xlu1 %v366_v7, %s2169_s3 }
 0x77e   :  { %v369_v9 = vpop.permute.xlu1 %368 }
 0x77f   :  { %v371_v10 = vadd.f32 %v369_v9, %v361_v8 }
 0x781   :  { %1984 = vtanh.f32 %v371_v10 }
 0x78b   :  { %v1985_v11 = vpop.eup %1984 }
 0x78c   :  { %374 = vrot.lane.b32.xlu0 %v1985_v11, %s2163_s27 }
 0x7fe   :  { %v375_v12 = vpop.permute.xlu0 %374 }
 0x7ff   :  { %v377_v13 = vmul.f32 %v1983_v2, %v375_v12 }
 0x801   :  { %v2324_v14 = vpack.c.bf16 %v377_v13, %v377_v13 }
 0x803   :  { %387 = vrot.lane.b32.xlu1 %v2324_v14, %s2169_s3 }
 0x875   :  { %v388_v15 = vpop.permute.xlu1 %387 }
 0x876   :  { %1800 = vmatmul.mubr.msk.bf16.vlgmr.msra.gmra.mrb[16].mxu0 %vm154_vm3, %v388_v15 }
 0x877   :  { %1812 = vmatpush3.bf16.msra.mxu0 %v2268_v3  ;;  %1815 = vmatprep.mubr.msk.bf16.mxu0 %vm2167_vm0, %v2166_v0 }
 0x878   :  { %1813 = vmatprep.subr.bf16.mxu0 %v2166_v0 }
 0x87b   :  { %1814 = vmatpush3.bf16.msra.mxu0 %v2274_v4 }
 0x87c   :  { %1827 = vmatprep.subr.bf16.mxu0 %v2166_v0 }
 0x949   :  { %v426_v17 = vpop.f32.mrb[16].mxu0 }
 0x94a   :  { %v432_v18 = vadd.f32 %v426_v17, %v386_v16  ;;  %v1801_v19 = vpop.f32.mrb[17].mxu0 }
 0x94b   :  { %v429_v20 = vpop.f32.mrb[18].mxu0  ;;  %v623_v19 = vld [vmem:[#allocation2 + $0xc] sm:$0x3] }
 0x94c   :  { %1986 = vtanh.f32 %v432_v18  ;;  %v1802_v21 = vpop.f32.mrb[19].mxu0  ;;  %v1657_v23 = vmul.f32 -1.442695, %v432_v18 }
 0x94e   :  { %1988 = vpow2.f32 %v1657_v23 }
 0x956   :  { %v1987_v22 = vpop.eup %1986 }
 0x957   :  { %442 = vrot.lane.b32.xlu0 %v1987_v22, %s2163_s27 }
 0x958   :  { %v1989_v24 = vpop.eup %1988 }
 0x959   :  { %v436_v25 = vadd.f32 1.0, %v1989_v24 }
 0x95b   :  { %1990 = vrcp.f32 %v436_v25 }
 0x965   :  { %v1991_v26 = vpop.eup %1990 }
 0x966   :  { %v440_v29 = vmul.f32 %v1991_v26, %v371_v10 }
 0x9c9   :  { %v443_v27 = vpop.permute.xlu0 %442 }
 0x9ca   :  { %v445_v28 = vmul.f32 %v1991_v26, %v443_v27 }
 0x9cc   :  { %447 = vrot.lane.b32.xlu1 %v445_v28, %s2169_s3 }
 0xa3e   :  { %v448_v30 = vpop.permute.xlu1 %447 }
 0xa3f   :  { %v450_v31 = vadd.f32 %v448_v30, %v440_v29 }
 0xa41   :  { %1992 = vtanh.f32 %v450_v31 }
 0xa4b   :  { %v1993_v32 = vpop.eup %1992 }
 0xa4c   :  { %453 = vrot.lane.b32.xlu0 %v1993_v32, %s2163_s27 }
 0xabe   :  { %v454_v33 = vpop.permute.xlu0 %453 }
 0xabf   :  { %v456_v34 = vmul.f32 %v1991_v26, %v454_v33 }
 0xac1   :  { %v2338_v35 = vpack.c.bf16 %v456_v34, %v456_v34 }
 0xac3   :  { %466 = vrot.lane.b32.xlu1 %v2338_v35, %s2169_s3 }
 0xb35   :  { %v467_v36 = vpop.permute.xlu1 %466 }
 0xb36   :  { %1808 = vmatmul.mubr.msk.bf16.vlgmr.msra.gmra.mrb[0].mxu1 %vm154_vm3, %v467_v36 }
 0xb37   :  { %1820 = vmatpush3.bf16.msra.mxu1 %v2268_v3  ;;  %1823 = vmatprep.mubr.msk.bf16.mxu1 %vm2167_vm0, %v2166_v0 }
 0xb38   :  { %1821 = vmatprep.subr.bf16.mxu1 %v2166_v0 }
 0xb3b   :  { %1822 = vmatpush3.bf16.msra.mxu1 %v2274_v4 }
 0xb3c   :  { %1835 = vmatprep.subr.bf16.mxu1 %v2166_v0 }
 0xc09   :  { %v505_v38 = vpop.f32.mrb[0].mxu1 }
 0xc0a   :  { %v511_v39 = vadd.f32 %v505_v38, %v465_v37  ;;  %v1809_v40 = vpop.f32.mrb[1].mxu1 }
 0xc0b   :  { %v508_v41 = vpop.f32.mrb[2].mxu1 }
 0xc0c   :  { %1994 = vtanh.f32 %v511_v39  ;;  %v1810_v42 = vpop.f32.mrb[3].mxu1  ;;  %v1659_v44 = vmul.f32 -1.442695, %v511_v39  ;;  %v702_v41 = vld [vmem:[#allocation2 + $0xe] sm:$0x3] }
 0xc0e   :  { %1996 = vpow2.f32 %v1659_v44 }
 0xc16   :  { %v1995_v43 = vpop.eup %1994 }
 0xc17   :  { %521 = vrot.lane.b32.xlu0 %v1995_v43, %s2163_s27 }
 0xc18   :  { %v1997_v45 = vpop.eup %1996 }
 0xc19   :  { %v515_v46 = vadd.f32 1.0, %v1997_v45 }
 0xc1b   :  { %1998 = vrcp.f32 %v515_v46 }
 0xc25   :  { %v1999_v47 = vpop.eup %1998 }
 0xc26   :  { %v519_v50 = vmul.f32 %v1999_v47, %v450_v31 }
 0xc89   :  { %v522_v48 = vpop.permute.xlu0 %521 }
 0xc8a   :  { %v524_v49 = vmul.f32 %v1999_v47, %v522_v48 }
 0xc8c   :  { %526 = vrot.lane.b32.xlu1 %v524_v49, %s2169_s3 }
 0xcfe   :  { %v527_v51 = vpop.permute.xlu1 %526 }
 0xcff   :  { %v529_v52 = vadd.f32 %v527_v51, %v519_v50 }
 0xd01   :  { %2000 = vtanh.f32 %v529_v52 }
 0xd0b   :  { %v2001_v54 = vpop.eup %2000 }
 0xd0c   :  { %532 = vrot.lane.b32.xlu0 %v2001_v54, %s2163_s27 }
 0xd7e   :  { %v533_v55 = vpop.permute.xlu0 %532 }
 0xd7f   :  { %v535_v56 = vmul.f32 %v1999_v47, %v533_v55  ;;  %v301_v55 = vrot.slane %v2310_v53, 7 }
 0xd81   :  { %v2352_v57 = vpack.c.bf16 %v535_v56, %v535_v56  ;;  %v459_v56 = vrot.slane %v2338_v35, 5  ;;  %v380_v35 = vrot.slane %v2324_v14, 6 }
 0xd83   :  { %545 = vrot.lane.b32.xlu1 %v2352_v57, %s2169_s3 }
 0xdf5   :  { %v546_v58 = vpop.permute.xlu1 %545 }
 0xdf6   :  { %1816 = vmatmul.mubr.msk.bf16.vlgmr.msra.gmra.mrb[20].mxu0 %vm154_vm3, %v546_v58 }
 0xdf7   :  { %1828 = vmatpush3.bf16.msra.mxu0 %v2268_v3  ;;  %1831 = vmatprep.mubr.msk.bf16.mxu0 %vm2167_vm0, %v2166_v0 }
 0xdf8   :  { %1829 = vmatprep.subr.bf16.mxu0 %v2166_v0 }
 0xdfb   :  { %1830 = vmatpush3.bf16.msra.mxu0 %v2274_v4 }
 0xdfc   :  { %1843 = vmatprep.subr.bf16.mxu0 %v2166_v0 }
 0xec9   :  { %v584_v60 = vpop.f32.mrb[20].mxu0 }
 0xeca   :  { %v590_v61 = vadd.f32 %v584_v60, %v544_v59  ;;  %v1817_v62 = vpop.f32.mrb[21].mxu0 }
 0xecb   :  { %v587_v63 = vpop.f32.mrb[22].mxu0 }
 0xecc   :  { %2002 = vtanh.f32 %v590_v61  ;;  %v1818_v1 = vpop.f32.mrb[23].mxu0  ;;  %v1661_v3 = vmul.f32 -1.442695, %v590_v61 }
 0xece   :  { %2004 = vpow2.f32 %v1661_v3 }
 0xed6   :  { %v2003_v2 = vpop.eup %2002 }
 0xed7   :  { %600 = vrot.lane.b32.xlu0 %v2003_v2, %s2163_s27  ;;  %v538_v2 = vrot.slane %v2352_v57, 4  ;;  %v2400_v57 = vld [vmem:[%s2565_s5] sm:$0xff]  }
 0xed8   :  { %v2005_v6 = vpop.eup %2004 }
 0xed9   :  { %v594_v7 = vadd.f32 1.0, %v2005_v6  ;;  %v1948_v6 = vld [vmem:[%s2564_s4] sm:$0xff]  }
 0xedb   :  { %2006 = vrcp.f32 %v594_v7  ;;  %v1949_v7 = vld [vmem:[%s2564_s4 + $0x8] sm:$0xff]   ;;  %s1635_s4 = sshll.u32 %s2170_s16, 4  ;;  %s1636_s4 = int_to_ptr.vmem [resolvable:$true] %s1635_s4 }
 0xedc   :  { %p2139_p3 = scmp.lt.s32.totalorder %s1636_s4, %s1636_s4 }
 0xee5   :  { %v2007_v8 = vpop.eup %2006 }
 0xee6   :  { %v598_v10 = vmul.f32 %v2007_v8, %v529_v52 }
 0xf49   :  { %v601_v9 = vpop.permute.xlu0 %600 }
 0xf4a   :  { %v603_v4 = vmul.f32 %v2007_v8, %v601_v9 }
 0xf4c   :  { %605 = vrot.lane.b32.xlu1 %v603_v4, %s2169_s3  ;;  %v2407_v4 = vld [vmem:[%s2565_s5 + $0x8] sm:$0xff]  }
 0xfbe   :  { %v606_v11 = vpop.permute.xlu1 %605 }
 0xfbf   :  { %v608_v12 = vadd.f32 %v606_v11, %v598_v10 }
 0xfc1   :  { %2008 = vtanh.f32 %v608_v12 }
 0xfcb   :  { %v2009_v13 = vpop.eup %2008 }
 0xfcc   :  { %611 = vrot.lane.b32.xlu0 %v2009_v13, %s2163_s27 }
0x103e   :  { %v612_v15 = vpop.permute.xlu0 %611 }
0x103f   :  { %v614_v16 = vmul.f32 %v2007_v8, %v612_v15 }
0x1041   :  { %v615_v17 = vpack.c.bf16 %v614_v16, %v614_v16 }
0x1043   :  { %624 = vrot.lane.b32.xlu1 %v615_v17, %s2169_s3  ;;  %v617_v58 = vrot.slane %v615_v17, 3 }
0x10b5   :  { %v625_v18 = vpop.permute.xlu1 %624 }
0x10b6   :  { %1824 = vmatmul.mubr.msk.bf16.vlgmr.msra.gmra.mrb[4].mxu1 %vm154_vm3, %v625_v18 }
0x10b7   :  { %1839 = vmatprep.mubr.msk.bf16.mxu1 %vm2167_vm0, %v2166_v0  ;;  %1836 = vmatpush3.bf16.msra.mxu1 %v1948_v6 }
0x10b8   :  { %1837 = vmatprep.subr.bf16.mxu1 %v2166_v0 }
0x10bb   :  { %1838 = vmatpush3.bf16.msra.mxu1 %v1949_v7 }
0x10bc   :  { %1851 = vmatprep.subr.bf16.mxu1 %v2166_v0 }
0x1189   :  { %v663_v20 = vpop.f32.mrb[4].mxu1 }
0x118a   :  { %v669_v21 = vadd.f32 %v663_v20, %v623_v19  ;;  %v1825_v22 = vpop.f32.mrb[5].mxu1  ;;  %v1666_v20 = vld [vmem:[%s2566_s6] ss:$0 sm:$0xff] }
0x118b   :  { %v666_v23 = vpop.f32.mrb[6].mxu1 }
0x118c   :  { %2010 = vtanh.f32 %v669_v21  ;;  %v1826_v24 = vpop.f32.mrb[7].mxu1  ;;  %v1663_v26 = vmul.f32 -1.442695, %v669_v21 }
0x118e   :  { %2012 = vpow2.f32 %v1663_v26 }
0x1196   :  { %v2011_v25 = vpop.eup %2010 }
0x1197   :  { %679 = vrot.lane.b32.xlu0 %v2011_v25, %s2163_s27 }
0x1198   :  { %v2013_v27 = vpop.eup %2012 }
0x1199   :  { %v673_v28 = vadd.f32 1.0, %v2013_v27 }
0x119b   :  { %2014 = vrcp.f32 %v673_v28 }
0x11a5   :  { %v2015_v29 = vpop.eup %2014 }
0x11a6   :  { %v677_v32 = vmul.f32 %v2015_v29, %v608_v12 }
0x1209   :  { %v680_v30 = vpop.permute.xlu0 %679 }
0x120a   :  { %v682_v31 = vmul.f32 %v2015_v29, %v680_v30 }
0x120c   :  { %684 = vrot.lane.b32.xlu1 %v682_v31, %s2169_s3 }
0x127e   :  { %v685_v33 = vpop.permute.xlu1 %684 }
0x127f   :  { %v687_v34 = vadd.f32 %v685_v33, %v677_v32 }
0x1281   :  { %2016 = vtanh.f32 %v687_v34 }
0x128b   :  { %v2017_v36 = vpop.eup %2016 }
0x128c   :  { %690 = vrot.lane.b32.xlu0 %v2017_v36, %s2163_s27 }
0x12fe   :  { %v691_v37 = vpop.permute.xlu0 %690 }
0x12ff   :  { %v693_v38 = vmul.f32 %v2015_v29, %v691_v37 }
0x1301   :  { %v694_v39 = vpack.c.bf16 %v693_v38, %v693_v38 }
0x1303   :  { %703 = vrot.lane.b32.xlu1 %v694_v39, %s2169_s3  ;;  %v696_v3 = vrot.slane %v694_v39, 2 }
0x1375   :  { %v704_v40 = vpop.permute.xlu1 %703 }
0x1376   :  { %1832 = vmatmul.mubr.msk.bf16.vlgmr.msra.gmra.mrb[24].mxu0 %vm154_vm3, %v704_v40 }
0x1377   :  { %1847 = vmatprep.mubr.msk.bf16.mxu0 %vm2167_vm0, %v2166_v0  ;;  %1844 = vmatpush3.bf16.msra.mxu0 %v2400_v57 }
0x1378   :  { %1845 = vmatprep.subr.bf16.mxu0 %v2166_v0 }
0x137b   :  { %1846 = vmatpush3.bf16.msra.mxu0 %v2407_v4 }
0x137c   :  { %1859 = vmatprep.subr.bf16.mxu0 %v2166_v0 }
0x137e   :  { %1848 = vmatmul.mubr.bf16.vlgmr.msra.gmra.mrb[28].mxu0 %v2168_v5 }
0x137f   :  { %1860 = vmatpush3.bf16.msra.mxu0 %v2400_v57  ;;  %1863 = vmatprep.mubr.msk.bf16.mxu0 %vm2167_vm0, %v2166_v0 }
0x1380   :  { %1861 = vmatprep.subr.bf16.mxu0 %v2166_v0 }
0x1383   :  { %1862 = vmatpush3.bf16.msra.mxu0 %v2407_v4 }
0x1384   :  { %1875 = vmatprep.subr.bf16.mxu0 %v2166_v0 }
0x1449   :  { %v742_v42 = vpop.f32.mrb[24].mxu0 }
0x144a   :  { %v748_v43 = vadd.f32 %v742_v42, %v702_v41  ;;  %v1833_v44 = vpop.f32.mrb[25].mxu0 }
0x144b   :  { %v745_v45 = vpop.f32.mrb[26].mxu0 }
0x144c   :  { %2018 = vtanh.f32 %v748_v43  ;;  %v1834_v46 = vpop.f32.mrb[27].mxu0  ;;  %v1665_v48 = vmul.f32 -1.442695, %v748_v43 }
0x144e   :  { %2020 = vpow2.f32 %v1665_v48 }
0x1451   :  { %v902_v5 = vpop.f32.mrb[28].mxu0 }
0x1452   :  { %v1849_v17 = vpop.f32.mrb[29].mxu0 }
0x1453   :  { %v905_v18 = vpop.f32.mrb[30].mxu0 }
0x1454   :  { %v1850_v19 = vpop.f32.mrb[31].mxu0 }
0x1456   :  { %v2019_v47 = vpop.eup %2018 }
0x1457   :  { %758 = vrot.lane.b32.xlu0 %v2019_v47, %s2163_s27 }
0x1458   :  { %v2021_v49 = vpop.eup %2020 }
0x1459   :  { %v752_v50 = vadd.f32 1.0, %v2021_v49 }
0x145b   :  { %2022 = vrcp.f32 %v752_v50 }
0x1465   :  { %v2023_v51 = vpop.eup %2022 }
0x1466   :  { %v756_v59 = vmul.f32 %v2023_v51, %v687_v34 }
0x14c9   :  { %v759_v52 = vpop.permute.xlu0 %758 }
0x14ca   :  { %v761_v54 = vmul.f32 %v2023_v51, %v759_v52 }
0x14cc   :  { %763 = vrot.lane.b32.xlu1 %v761_v54, %s2169_s3 }
0x14d0   :  { %302 = vrot.lane.b32.xlu1 %v301_v55, %s2169_s3 }
0x14d4   :  { %460 = vrot.lane.b32.xlu1 %v459_v56, %s2169_s3 }
0x14d8   :  { %618 = vrot.lane.b32.xlu1 %v617_v58, %s2169_s3 }
0x153e   :  { %v764_v60 = vpop.permute.xlu1 %763 }
0x153f   :  { %v766_v61 = vadd.f32 %v764_v60, %v756_v59 }
0x1541   :  { %2024 = vtanh.f32 %v766_v61 }
0x1542   :  { %v303_v62 = vpop.permute.xlu1 %302 }
0x1543   :  { %306 = vst.msk [vmem:[#allocation3] sm:$0x2] %vm305_vm4, %v303_v62 }
0x1546   :  { %v461_v63 = vpop.permute.xlu1 %460 }
0x1547   :  { %464 = vst.msk [vmem:[#allocation3] sm:$0x8] %vm463_vm5, %v461_v63 }
0x154a   :  { %v619_v53 = vpop.permute.xlu1 %618 }
0x154b   :  { %v2025_v1 = vpop.eup %2024  ;;  %622 = vst.msk [vmem:[#allocation3] sm:$0x20] %vm621_vm6, %v619_v53 }
0x154c   :  { %769 = vrot.lane.b32.xlu0 %v2025_v1, %s2163_s27 }
0x1550   :  { %381 = vrot.lane.b32.xlu0 %v380_v35, %s2169_s3 }
0x1554   :  { %539 = vrot.lane.b32.xlu0 %v538_v2, %s2169_s3 }
0x1558   :  { %697 = vrot.lane.b32.xlu0 %v696_v3, %s2169_s3 }
0x15be   :  { %v770_v14 = vpop.permute.xlu0 %769 }
0x15bf   :  { %v772_v8 = vmul.f32 %v2023_v51, %v770_v14 }
0x15c1   :  { %v773_v9 = vpack.c.bf16 %v772_v8, %v772_v8 }
0x15c2   :  { %v382_v10 = vpop.permute.xlu0 %381 }
0x15c3   :  { %v775_v11 = vrot.slane %v773_v9, 1  ;;  %385 = vst.msk [vmem:[#allocation3] sm:$0x4] %vm384_vm7, %v382_v10 }
0x15c5   :  { %776 = vrot.lane.b32.xlu1 %v775_v11, %s2169_s3 }
0x15c6   :  { %v540_v12 = vpop.permute.xlu0 %539 }
0x15c7   :  { %543 = vst.msk [vmem:[#allocation3] sm:$0x10] %vm542_vm8, %v540_v12 }
0x15ca   :  { %v698_v13 = vpop.permute.xlu0 %697 }
0x15cb   :  { %701 = vst.msk [vmem:[#allocation3] sm:$0x40] %vm700_vm9, %v698_v13 }
0x1637   :  { %v777_v15 = vpop.permute.xlu1 %776 }
0x1638   :  { %780 = vst.msk [vmem:[#allocation3] sm:$0x80] %vm779_vm10, %v777_v15 }
0x163f   :  { %v781_v16 = vld [vmem:[#allocation3] sm:$0xff] }
0x1640   :  { %1840 = vmatmul.mubr.msk.bf16.vlgmr.msra.gmra.mrb[8].mxu1 %vm154_vm3, %v781_v16 }
0x1641   :  { %1852 = vmatpush3.bf16.msra.mxu1 %v2400_v57  ;;  %1855 = vmatprep.mubr.msk.bf16.mxu1 %vm2167_vm0, %v2166_v0 }
0x1642   :  { %1853 = vmatprep.subr.bf16.mxu1 %v2166_v0 }
0x1645   :  { %1854 = vmatpush3.bf16.msra.mxu1 %v2407_v4 }
0x1646   :  { %1867 = vmatprep.subr.bf16.mxu1 %v2166_v0 }
0x1713   :  { %v842_v21 = vpop.f32.mrb[8].mxu1 }
0x1714   :  { %v843_v22 = vadd.f32 %v1666_v20, %v842_v21  ;;  %v1841_v23 = vpop.f32.mrb[9].mxu1 }
0x1715   :  { %v845_v24 = vpop.f32.mrb[10].mxu1 }
0x1716   :  { %849 = vst [vmem:[#allocation2] sm:$0xff] %v843_v22  ;;  %v846_v25 = vadd.f32 %v1666_v20, %v845_v24  ;;  %v1842_v26 = vpop.f32.mrb[11].mxu1 }
0x1718   :  { %850 = vst [vmem:[#allocation2 + $0x8] sm:$0xff] %v846_v25 }
0x171d   :  { %v855_v27 = vld [vmem:[#allocation2] sm:$0x3]  ;;  %v934_v45 = vld [vmem:[#allocation2 + $0x2] sm:$0x3]  ;;  %v1007_v3 = vld [vmem:[#allocation2 + $0x4] sm:$0x3] }
0x171e   :  { %v908_v28 = vadd.f32 %v902_v5, %v855_v27  ;;  %v1080_v25 = vld [vmem:[#allocation2 + $0x6] sm:$0x3] }
0x1720   :  { %2026 = vtanh.f32 %v908_v28  ;;  %v1672_v30 = vmul.f32 -1.442695, %v908_v28 }
0x1722   :  { %2028 = vpow2.f32 %v1672_v30 }
0x172a   :  { %v2027_v29 = vpop.eup %2026 }
0x172b   :  { %918 = vrot.lane.b32.xlu0 %v2027_v29, %s2163_s27 }
0x172c   :  { %v2029_v31 = vpop.eup %2028 }
0x172d   :  { %v912_v32 = vadd.f32 1.0, %v2029_v31 }
0x172f   :  { %2030 = vrcp.f32 %v912_v32 }
0x1739   :  { %v2031_v33 = vpop.eup %2030 }
0x173a   :  { %v916_v37 = vmul.f32 0.0, %v2031_v33 }
0x179d   :  { %v919_v34 = vpop.permute.xlu0 %918 }
0x179e   :  { %v921_v36 = vmul.f32 %v2031_v33, %v919_v34 }
0x17a0   :  { %923 = vrot.lane.b32.xlu1 %v921_v36, %s2169_s3 }
0x1812   :  { %v924_v38 = vpop.permute.xlu1 %923 }
0x1813   :  { %v926_v39 = vadd.f32 %v924_v38, %v916_v37 }
0x1815   :  { %2032 = vtanh.f32 %v926_v39 }
0x181f   :  { %v2033_v40 = vpop.eup %2032 }
0x1820   :  { %929 = vrot.lane.b32.xlu0 %v2033_v40, %s2163_s27 }
0x1892   :  { %v930_v41 = vpop.permute.xlu0 %929 }
0x1893   :  { %v932_v42 = vmul.f32 %v2031_v33, %v930_v41 }
0x1895   :  { %v933_v43 = vpack.c.bf16 %v932_v42, %v932_v42 }
0x1897   :  { %936 = vrot.lane.b32.xlu1 %v933_v43, %s2169_s3 }
0x1909   :  { %v937_v44 = vpop.permute.xlu1 %936 }
0x190a   :  { %1856 = vmatmul.mubr.msk.bf16.vlgmr.msra.gmra.mrb[12].mxu1 %vm154_vm3, %v937_v44 }
0x190b   :  { %1868 = vmatpush3.bf16.msra.mxu1 %v2400_v57  ;;  %1871 = vmatprep.mubr.msk.bf16.mxu1 %vm2167_vm0, %v2166_v0 }
0x190c   :  { %1869 = vmatprep.subr.bf16.mxu1 %v2166_v0 }
0x190f   :  { %1870 = vmatpush3.bf16.msra.mxu1 %v2407_v4 }
0x1910   :  { %1883 = vmatprep.subr.bf16.mxu1 %v2166_v0 }
0x19dd   :  { %v975_v46 = vpop.f32.mrb[12].mxu1 }
0x19de   :  { %v981_v47 = vadd.f32 %v975_v46, %v934_v45  ;;  %v1857_v48 = vpop.f32.mrb[13].mxu1 }
0x19df   :  { %v978_v49 = vpop.f32.mrb[14].mxu1 }
0x19e0   :  { %2034 = vtanh.f32 %v981_v47  ;;  %v1858_v50 = vpop.f32.mrb[15].mxu1  ;;  %v1674_v52 = vmul.f32 -1.442695, %v981_v47  ;;  %v1153_v47 = vld [vmem:[#allocation2 + $0x8] sm:$0x3] }
0x19e2   :  { %2036 = vpow2.f32 %v1674_v52 }
0x19ea   :  { %v2035_v51 = vpop.eup %2034 }
0x19eb   :  { %991 = vrot.lane.b32.xlu0 %v2035_v51, %s2163_s27 }
0x19ec   :  { %v2037_v54 = vpop.eup %2036 }
0x19ed   :  { %v985_v55 = vadd.f32 1.0, %v2037_v54 }
0x19ef   :  { %2038 = vrcp.f32 %v985_v55 }
0x19f9   :  { %v2039_v56 = vpop.eup %2038 }
0x19fa   :  { %v989_v60 = vmul.f32 %v2039_v56, %v926_v39 }
0x1a5d   :  { %v992_v58 = vpop.permute.xlu0 %991 }
0x1a5e   :  { %v994_v59 = vmul.f32 %v2039_v56, %v992_v58 }
0x1a60   :  { %996 = vrot.lane.b32.xlu1 %v994_v59, %s2169_s3 }
0x1ad2   :  { %v997_v61 = vpop.permute.xlu1 %996 }
0x1ad3   :  { %v999_v62 = vadd.f32 %v997_v61, %v989_v60 }
0x1ad5   :  { %2040 = vtanh.f32 %v999_v62 }
0x1adf   :  { %v2041_v63 = vpop.eup %2040 }
0x1ae0   :  { %1002 = vrot.lane.b32.xlu0 %v2041_v63, %s2163_s27 }
0x1b52   :  { %v1003_v53 = vpop.permute.xlu0 %1002 }
0x1b53   :  { %v1005_v1 = vmul.f32 %v2039_v56, %v1003_v53 }
0x1b55   :  { %v1006_v35 = vpack.c.bf16 %v1005_v1, %v1005_v1 }
0x1b57   :  { %1009 = vrot.lane.b32.xlu1 %v1006_v35, %s2169_s3 }
0x1bc9   :  { %v1010_v2 = vpop.permute.xlu1 %1009 }
0x1bca   :  { %1864 = vmatmul.mubr.msk.bf16.vlgmr.msra.gmra.mrb[32].mxu0 %vm154_vm3, %v1010_v2 }
0x1bcb   :  { %1876 = vmatpush3.bf16.msra.mxu0 %v2400_v57  ;;  %1879 = vmatprep.mubr.msk.bf16.mxu0 %vm2167_vm0, %v2166_v0 }
0x1bcc   :  { %1877 = vmatprep.subr.bf16.mxu0 %v2166_v0 }
0x1bcf   :  { %1878 = vmatpush3.bf16.msra.mxu0 %v2407_v4 }
0x1bd0   :  { %1891 = vmatprep.subr.bf16.mxu0 %v2166_v0 }
0x1c9d   :  { %v1048_v6 = vpop.f32.mrb[32].mxu0 }
0x1c9e   :  { %v1054_v7 = vadd.f32 %v1048_v6, %v1007_v3  ;;  %v1865_v14 = vpop.f32.mrb[33].mxu0 }
0x1c9f   :  { %v1051_v8 = vpop.f32.mrb[34].mxu0 }
0x1ca0   :  { %2042 = vtanh.f32 %v1054_v7  ;;  %v1866_v9 = vpop.f32.mrb[35].mxu0  ;;  %v1676_v11 = vmul.f32 -1.442695, %v1054_v7  ;;  %v1226_v7 = vld [vmem:[#allocation2 + $0xa] sm:$0x3] }
0x1ca2   :  { %2044 = vpow2.f32 %v1676_v11 }
0x1caa   :  { %v2043_v10 = vpop.eup %2042 }
0x1cab   :  { %1064 = vrot.lane.b32.xlu0 %v2043_v10, %s2163_s27 }
0x1cac   :  { %v2045_v12 = vpop.eup %2044 }
0x1cad   :  { %v1058_v13 = vadd.f32 1.0, %v2045_v12 }
0x1caf   :  { %2046 = vrcp.f32 %v1058_v13 }
0x1cb9   :  { %v2047_v15 = vpop.eup %2046 }
0x1cba   :  { %v1062_v17 = vmul.f32 %v2047_v15, %v999_v62 }
0x1d1d   :  { %v1065_v16 = vpop.permute.xlu0 %1064 }
0x1d1e   :  { %v1067_v5 = vmul.f32 %v2047_v15, %v1065_v16 }
0x1d20   :  { %1069 = vrot.lane.b32.xlu1 %v1067_v5, %s2169_s3 }
0x1d92   :  { %v1070_v18 = vpop.permute.xlu1 %1069 }
0x1d93   :  { %v1072_v19 = vadd.f32 %v1070_v18, %v1062_v17 }
0x1d95   :  { %2048 = vtanh.f32 %v1072_v19 }
0x1d9f   :  { %v2049_v20 = vpop.eup %2048 }
0x1da0   :  { %1075 = vrot.lane.b32.xlu0 %v2049_v20, %s2163_s27 }
0x1e12   :  { %v1076_v21 = vpop.permute.xlu0 %1075 }
0x1e13   :  { %v1078_v22 = vmul.f32 %v2047_v15, %v1076_v21 }
0x1e15   :  { %v1079_v23 = vpack.c.bf16 %v1078_v22, %v1078_v22 }
0x1e17   :  { %1082 = vrot.lane.b32.xlu1 %v1079_v23, %s2169_s3 }
0x1e89   :  { %v1083_v24 = vpop.permute.xlu1 %1082 }
0x1e8a   :  { %1872 = vmatmul.mubr.msk.bf16.vlgmr.msra.gmra.mrb[16].mxu1 %vm154_vm3, %v1083_v24 }
0x1e8b   :  { %1884 = vmatpush3.bf16.msra.mxu1 %v2400_v57  ;;  %1887 = vmatprep.mubr.msk.bf16.mxu1 %vm2167_vm0, %v2166_v0 }
0x1e8c   :  { %1885 = vmatprep.subr.bf16.mxu1 %v2166_v0 }
0x1e8f   :  { %1886 = vmatpush3.bf16.msra.mxu1 %v2407_v4 }
0x1e90   :  { %1899 = vmatprep.subr.bf16.mxu1 %v2166_v0 }
0x1f5d   :  { %v1121_v26 = vpop.f32.mrb[16].mxu1 }
0x1f5e   :  { %v1127_v27 = vadd.f32 %v1121_v26, %v1080_v25  ;;  %v1873_v28 = vpop.f32.mrb[17].mxu1  ;;  %v1299_v25 = vld [vmem:[#allocation2 + $0xc] sm:$0x3] }
0x1f5f   :  { %v1124_v29 = vpop.f32.mrb[18].mxu1 }
0x1f60   :  { %2050 = vtanh.f32 %v1127_v27  ;;  %v1874_v30 = vpop.f32.mrb[19].mxu1  ;;  %v1678_v32 = vmul.f32 -1.442695, %v1127_v27 }
0x1f62   :  { %2052 = vpow2.f32 %v1678_v32 }
0x1f6a   :  { %v2051_v31 = vpop.eup %2050 }
0x1f6b   :  { %1137 = vrot.lane.b32.xlu0 %v2051_v31, %s2163_s27 }
0x1f6c   :  { %v2053_v33 = vpop.eup %2052 }
0x1f6d   :  { %v1131_v34 = vadd.f32 1.0, %v2053_v33 }
0x1f6f   :  { %2054 = vrcp.f32 %v1131_v34 }
0x1f79   :  { %v2055_v36 = vpop.eup %2054 }
0x1f7a   :  { %v1135_v39 = vmul.f32 %v2055_v36, %v1072_v19 }
0x1fdd   :  { %v1138_v37 = vpop.permute.xlu0 %1137 }
0x1fde   :  { %v1140_v38 = vmul.f32 %v2055_v36, %v1138_v37 }
0x1fe0   :  { %1142 = vrot.lane.b32.xlu1 %v1140_v38, %s2169_s3 }
0x2052   :  { %v1143_v40 = vpop.permute.xlu1 %1142 }
0x2053   :  { %v1145_v41 = vadd.f32 %v1143_v40, %v1135_v39 }
0x2055   :  { %2056 = vtanh.f32 %v1145_v41 }
0x205f   :  { %v2057_v42 = vpop.eup %2056 }
0x2060   :  { %1148 = vrot.lane.b32.xlu0 %v2057_v42, %s2163_s27 }
0x20d2   :  { %v1149_v43 = vpop.permute.xlu0 %1148 }
0x20d3   :  { %v1151_v44 = vmul.f32 %v2055_v36, %v1149_v43 }
0x20d5   :  { %v1152_v45 = vpack.c.bf16 %v1151_v44, %v1151_v44 }
0x20d7   :  { %1155 = vrot.lane.b32.xlu1 %v1152_v45, %s2169_s3 }
0x2149   :  { %v1156_v46 = vpop.permute.xlu1 %1155 }
0x214a   :  { %1880 = vmatmul.mubr.msk.bf16.vlgmr.msra.gmra.mrb[36].mxu0 %vm154_vm3, %v1156_v46 }
0x214b   :  { %1892 = vmatpush3.bf16.msra.mxu0 %v2400_v57  ;;  %1895 = vmatprep.mubr.msk.bf16.mxu0 %vm2167_vm0, %v2166_v0 }
0x214c   :  { %1893 = vmatprep.subr.bf16.mxu0 %v2166_v0 }
0x214f   :  { %1894 = vmatpush3.bf16.msra.mxu0 %v2407_v4 }
0x2150   :  { %1907 = vmatprep.subr.bf16.mxu0 %v2166_v0 }
0x221d   :  { %v1194_v48 = vpop.f32.mrb[36].mxu0 }
0x221e   :  { %v1200_v49 = vadd.f32 %v1194_v48, %v1153_v47  ;;  %v1881_v50 = vpop.f32.mrb[37].mxu0  ;;  %v1372_v47 = vld [vmem:[#allocation2 + $0xe] sm:$0x3] }
0x221f   :  { %v1197_v51 = vpop.f32.mrb[38].mxu0 }
0x2220   :  { %2058 = vtanh.f32 %v1200_v49  ;;  %v1882_v52 = vpop.f32.mrb[39].mxu0  ;;  %v1680_v55 = vmul.f32 -1.442695, %v1200_v49 }
0x2222   :  { %2060 = vpow2.f32 %v1680_v55 }
0x222a   :  { %v2059_v54 = vpop.eup %2058 }
0x222b   :  { %1210 = vrot.lane.b32.xlu0 %v2059_v54, %s2163_s27 }
0x222c   :  { %v2061_v56 = vpop.eup %2060 }
0x222d   :  { %v1204_v58 = vadd.f32 1.0, %v2061_v56 }
0x222f   :  { %2062 = vrcp.f32 %v1204_v58 }
0x2239   :  { %v2063_v59 = vpop.eup %2062 }
0x223a   :  { %v1208_v62 = vmul.f32 %v2063_v59, %v1145_v41 }
0x229d   :  { %v1211_v60 = vpop.permute.xlu0 %1210 }
0x229e   :  { %v1213_v61 = vmul.f32 %v2063_v59, %v1211_v60 }
0x22a0   :  { %1215 = vrot.lane.b32.xlu1 %v1213_v61, %s2169_s3 }
0x2312   :  { %v1216_v63 = vpop.permute.xlu1 %1215 }
0x2313   :  { %v1218_v53 = vadd.f32 %v1216_v63, %v1208_v62 }
0x2315   :  { %2064 = vtanh.f32 %v1218_v53 }
0x231f   :  { %v2065_v1 = vpop.eup %2064 }
0x2320   :  { %1221 = vrot.lane.b32.xlu0 %v2065_v1, %s2163_s27  ;;  %v1952_v1 = vld [vmem:[%s2567_s7] sm:$0xff]  }
0x2392   :  { %v1222_v35 = vpop.permute.xlu0 %1221 }
0x2393   :  { %v1224_v2 = vmul.f32 %v2063_v59, %v1222_v35  ;;  %v1953_v35 = vld [vmem:[%s2567_s7 + $0x8] sm:$0xff]  }
0x2395   :  { %v1225_v3 = vpack.c.bf16 %v1224_v2, %v1224_v2 }
0x2397   :  { %1228 = vrot.lane.b32.xlu1 %v1225_v3, %s2169_s3  ;;  %v1954_v3 = vld [vmem:[%s2569_s9] sm:$0xff]  }
0x2409   :  { %v1229_v6 = vpop.permute.xlu1 %1228 }
0x240a   :  { %1888 = vmatmul.mubr.msk.bf16.vlgmr.msra.gmra.mrb[20].mxu1 %vm154_vm3, %v1229_v6  ;;  %v1955_v6 = vld [vmem:[%s2569_s9 + $0x8] sm:$0xff]  }
0x240b   :  { %1900 = vmatpush3.bf16.msra.mxu1 %v2400_v57  ;;  %1903 = vmatprep.mubr.msk.bf16.mxu1 %vm2167_vm0, %v2166_v0 }
0x240c   :  { %1901 = vmatprep.subr.bf16.mxu1 %v2166_v0 }
0x240f   :  { %1902 = vmatpush3.bf16.msra.mxu1 %v2407_v4 }
0x2410   :  { %1915 = vmatprep.subr.bf16.mxu1 %v2166_v0 }
0x24dd   :  { %v1267_v14 = vpop.f32.mrb[20].mxu1 }
0x24de   :  { %v1273_v8 = vadd.f32 %v1267_v14, %v1226_v7  ;;  %v1889_v9 = vpop.f32.mrb[21].mxu1  ;;  %v1956_v7 = vld [vmem:[%s2569_s9 + $0x10] sm:$0xff]  }
0x24df   :  { %v1270_v10 = vpop.f32.mrb[22].mxu1  ;;  %v1957_v9 = vld [vmem:[%s2569_s9 + $0x18] sm:$0xff]  }
0x24e0   :  { %2066 = vtanh.f32 %v1273_v8  ;;  %v1890_v11 = vpop.f32.mrb[23].mxu1  ;;  %v1682_v57 = vmul.f32 -1.442695, %v1273_v8 }
0x24e1   :  { %v1958_v11 = vld [vmem:[%s2569_s9 + $0x20] sm:$0xff]  }
0x24e2   :  { %2068 = vpow2.f32 %v1682_v57 }
0x24ea   :  { %v2067_v12 = vpop.eup %2066 }
0x24eb   :  { %1283 = vrot.lane.b32.xlu0 %v2067_v12, %s2163_s27  ;;  %v1959_v12 = vld [vmem:[%s2569_s9 + $0x28] sm:$0xff]  }
0x24ec   :  { %v2069_v13 = vpop.eup %2068 }
0x24ed   :  { %v1277_v15 = vadd.f32 1.0, %v2069_v13  ;;  %v1960_v13 = vld [vmem:[%s2569_s9 + $0x30] sm:$0xff]  }
0x24ef   :  { %2070 = vrcp.f32 %v1277_v15  ;;  %v1961_v15 = vld [vmem:[%s2569_s9 + $0x38] sm:$0xff]  }
0x24f9   :  { %v2071_v16 = vpop.eup %2070 }
0x24fa   :  { %v1281_v17 = vmul.f32 %v2071_v16, %v1218_v53 }
0x255d   :  { %v1284_v5 = vpop.permute.xlu0 %1283 }
0x255e   :  { %v1286_v4 = vmul.f32 %v2071_v16, %v1284_v5 }
0x2560   :  { %1288 = vrot.lane.b32.xlu1 %v1286_v4, %s2169_s3 }
0x25d2   :  { %v1289_v18 = vpop.permute.xlu1 %1288 }
0x25d3   :  { %v1291_v19 = vadd.f32 %v1289_v18, %v1281_v17 }
0x25d5   :  { %2072 = vtanh.f32 %v1291_v19 }
0x25df   :  { %v2073_v20 = vpop.eup %2072 }
0x25e0   :  { %1294 = vrot.lane.b32.xlu0 %v2073_v20, %s2163_s27 }
0x2652   :  { %v1295_v21 = vpop.permute.xlu0 %1294 }
0x2653   :  { %v1297_v22 = vmul.f32 %v2071_v16, %v1295_v21  ;;  %v1687_v16 = vld [vmem:[%s2568_s8] ss:$0 sm:$0xff]  ;;  %s2134_s8 = scalar_lea.vmem %s1636_s4, 32 }
0x2654   :  { %p2135_p2 = scmp.ne.s32.totalorder %s1636_s4, %s2134_s8  ;;  %p2140_p4 = scmp.lt.s32.totalorder %s2134_s8, %s2134_s8 }
0x2655   :  { %v1298_v23 = vpack.c.bf16 %v1297_v22, %v1297_v22 }
0x2656   :  { %p2141_p5 = por %p2140_p4, %p2139_p3 }
0x2657   :  { %1301 = vrot.lane.b32.xlu1 %v1298_v23, %s2169_s3 }
0x2658   :  { %p2142_p6 = pnand %p2141_p5, %p2135_p2 }
0x26c9   :  { %v1302_v24 = vpop.permute.xlu1 %1301 }
0x26ca   :  { %1896 = vmatmul.mubr.msk.bf16.vlgmr.msra.gmra.mrb[40].mxu0 %vm154_vm3, %v1302_v24 }
0x26cb   :  { %1911 = vmatprep.mubr.msk.bf16.mxu0 %vm2167_vm0, %v2166_v0  ;;  %1908 = vmatpush3.bf16.msra.mxu0 %v1952_v1 }
0x26cc   :  { %1909 = vmatprep.subr.bf16.mxu0 %v2166_v0 }
0x26cf   :  { %1910 = vmatpush3.bf16.msra.mxu0 %v1953_v35 }
0x279d   :  { %v1340_v26 = vpop.f32.mrb[40].mxu0 }
0x279e   :  { %v1346_v27 = vadd.f32 %v1340_v26, %v1299_v25  ;;  %v1897_v28 = vpop.f32.mrb[41].mxu0 }
0x279f   :  { %v1343_v29 = vpop.f32.mrb[42].mxu0 }
0x27a0   :  { %2074 = vtanh.f32 %v1346_v27  ;;  %v1898_v30 = vpop.f32.mrb[43].mxu0  ;;  %v1684_v32 = vmul.f32 -1.442695, %v1346_v27 }
0x27a2   :  { %2076 = vpow2.f32 %v1684_v32 }
0x27aa   :  { %v2075_v31 = vpop.eup %2074 }
0x27ab   :  { %1356 = vrot.lane.b32.xlu0 %v2075_v31, %s2163_s27 }
0x27ac   :  { %v2077_v33 = vpop.eup %2076 }
0x27ad   :  { %v1350_v34 = vadd.f32 1.0, %v2077_v33 }
0x27af   :  { %2078 = vrcp.f32 %v1350_v34 }
0x27b9   :  { %v2079_v36 = vpop.eup %2078 }
0x27ba   :  { %v1354_v39 = vmul.f32 %v2079_v36, %v1291_v19 }
0x281d   :  { %v1357_v37 = vpop.permute.xlu0 %1356 }
0x281e   :  { %v1359_v38 = vmul.f32 %v2079_v36, %v1357_v37 }
0x2820   :  { %1361 = vrot.lane.b32.xlu1 %v1359_v38, %s2169_s3 }
0x2892   :  { %v1362_v40 = vpop.permute.xlu1 %1361 }
0x2893   :  { %v1364_v41 = vadd.f32 %v1362_v40, %v1354_v39 }
0x2895   :  { %2080 = vtanh.f32 %v1364_v41 }
0x289f   :  { %v2081_v42 = vpop.eup %2080 }
0x28a0   :  { %1367 = vrot.lane.b32.xlu0 %v2081_v42, %s2163_s27 }
0x2912   :  { %v1368_v43 = vpop.permute.xlu0 %1367 }
0x2913   :  { %v1370_v44 = vmul.f32 %v2079_v36, %v1368_v43 }
0x2915   :  { %v1371_v45 = vpack.c.bf16 %v1370_v44, %v1370_v44 }
0x2917   :  { %1374 = vrot.lane.b32.xlu1 %v1371_v45, %s2169_s3 }
0x2989   :  { %v1375_v46 = vpop.permute.xlu1 %1374 }
0x298a   :  { %1904 = vmatmul.mubr.msk.bf16.vlgmr.msra.gmra.mrb[24].mxu1 %vm154_vm3, %v1375_v46 }
0x298b   :  { %1931 = vmatprep.mubr.msk.bf16.mxu1 %vm2167_vm0, %v2166_v0  ;;  %1916 = vmatpush3.bf16.msra.mxu1 %v1954_v3 }
0x298c   :  { %1917 = vmatprep.subr.bf16.mxu1 %v2166_v0 }
0x298f   :  { %1918 = vmatpush3.bf16.msra.mxu1 %v1955_v6 }
0x2990   :  { %1919 = vmatprep.subr.bf16.mxu1 %v2166_v0 }
0x2993   :  { %1920 = vmatpush3.bf16.msra.mxu1 %v1956_v7 }
0x2994   :  { %1921 = vmatprep.subr.bf16.mxu1 %v2166_v0 }
0x2997   :  { %1922 = vmatpush3.bf16.msra.mxu1 %v1957_v9 }
0x2998   :  { %1923 = vmatprep.subr.bf16.mxu1 %v2166_v0 }
0x299b   :  { %1924 = vmatpush3.bf16.msra.mxu1 %v1958_v11 }
0x299c   :  { %1925 = vmatprep.subr.bf16.mxu1 %v2166_v0 }
0x299f   :  { %1926 = vmatpush3.bf16.msra.mxu1 %v1959_v12 }
0x29a0   :  { %1927 = vmatprep.subr.bf16.mxu1 %v2166_v0 }
0x29a3   :  { %1928 = vmatpush3.bf16.msra.mxu1 %v1960_v13 }
0x29a4   :  { %1929 = vmatprep.subr.bf16.mxu1 %v2166_v0  ;;  %v1691_v0 = vld [vmem:[%s2570_s10] ss:$0 sm:$0xff] }
0x29a7   :  { %1930 = vmatpush3.bf16.msra.mxu1 %v1961_v15 }
0x2a5d   :  { %v1413_v48 = vpop.f32.mrb[24].mxu1 }
0x2a5e   :  { %v1419_v49 = vadd.f32 %v1413_v48, %v1372_v47  ;;  %v1905_v50 = vpop.f32.mrb[25].mxu1 }
0x2a5f   :  { %v1416_v51 = vpop.f32.mrb[26].mxu1 }
0x2a60   :  { %2082 = vtanh.f32 %v1419_v49  ;;  %v1906_v52 = vpop.f32.mrb[27].mxu1  ;;  %v1686_v55 = vmul.f32 -1.442695, %v1419_v49 }
0x2a62   :  { %2084 = vpow2.f32 %v1686_v55 }
0x2a6a   :  { %v2083_v54 = vpop.eup %2082 }
0x2a6b   :  { %1429 = vrot.lane.b32.xlu0 %v2083_v54, %s2163_s27 }
0x2a6c   :  { %v2085_v56 = vpop.eup %2084 }
0x2a6d   :  { %v1423_v58 = vadd.f32 1.0, %v2085_v56 }
0x2a6f   :  { %2086 = vrcp.f32 %v1423_v58 }
0x2a79   :  { %v2087_v59 = vpop.eup %2086 }
0x2a7a   :  { %v1427_v62 = vmul.f32 %v2087_v59, %v1364_v41 }
0x2add   :  { %v1430_v60 = vpop.permute.xlu0 %1429 }
0x2ade   :  { %v1432_v61 = vmul.f32 %v2087_v59, %v1430_v60 }
0x2ae0   :  { %1434 = vrot.lane.b32.xlu1 %v1432_v61, %s2169_s3 }
0x2b52   :  { %v1435_v63 = vpop.permute.xlu1 %1434 }
0x2b53   :  { %v1437_v53 = vadd.f32 %v1435_v63, %v1427_v62 }
0x2b55   :  { %2088 = vtanh.f32 %v1437_v53 }
0x2b5f   :  { %v2089_v2 = vpop.eup %2088 }
0x2b60   :  { %1440 = vrot.lane.b32.xlu0 %v2089_v2, %s2163_s27 }
0x2bd2   :  { %v1441_v14 = vpop.permute.xlu0 %1440 }
0x2bd3   :  { %v1443_v8 = vmul.f32 %v2087_v59, %v1441_v14 }
0x2bd5   :  { %v1444_v10 = vpack.c.bf16 %v1443_v8, %v1443_v8 }
0x2bd7   :  { %1457 = vrot.lane.b32.xlu1 %v1444_v10, %s2169_s3 }
0x2c49   :  { %v1458_v57 = vpop.permute.xlu1 %1457 }
0x2c4a   :  { %1912 = vmatmul.mubr.msk.bf16.vlgmr.msra.gmra.mrb[44].mxu0 %vm154_vm3, %v1458_v57 }
0x2d1d   :  { %v1508_v5 = vpop.f32.mrb[44].mxu0 }
0x2d1e   :  { %v1509_v4 = vadd.f32 %v1687_v16, %v1508_v5  ;;  %v1913_v17 = vpop.f32.mrb[45].mxu0 }
0x2d1f   :  { %v1511_v18 = vpop.f32.mrb[46].mxu0 }
0x2d20   :  { %v1514_v19 = vmax.f32 %v1509_v4, 0.0  ;;  %v1914_v20 = vpop.f32.mrb[47].mxu0 }
0x2d22   :  { %v1515_v21 = vpack.c.bf16 %v1514_v19, %v1514_v19 }
0x2d24   :  { %1932 = vmatmul.mubr.bf16.vlgmr.msra.gmra.mrb[28].mxu1 %v1515_v21 }
0x2df7   :  { %v1621_v22 = vpop.f32.mrb[28].mxu1 }
0x2df8   :  { %v1622_v23 = vadd.f32 %v1691_v0, %v1621_v22  ;;  %v1933_v24 = vpop.f32.mrb[29].mxu1 }
0x2df9   :  { %v1624_v25 = vpop.f32.mrb[30].mxu1 }
0x2dfa   :  { %v1934_v26 = vpop.f32.mrb[31].mxu1  ;;  %1628 = vst.msk [vmem:[#allocation9] sm:$0x3] %vm1627_vm11, %v1622_v23 }
0x2dfb   :  { %2145 = shalt.err (!%p2142_p6)
}
0x2dfc   :  { %s2146_s10 = scalar_lea.hbm %s2571_s11, 32 }
0x2dfd   :  { %p2147_p7 = scmp.ne.s32.totalorder %s2571_s11, %s2146_s10  ;;  %p2150_p8 = scmp.lt.u32.totalorder %s2146_s10, %s2571_s11 }
0x2dff   :  { %p2152_p9 = pnand %p2150_p8, %p2147_p7 }
0x2e01   :  { %2155 = shalt.err (!%p2152_p9)
}
0x2e02   :  { %1638 = dma.vmem_to_hbm [thread:$0]  %s1636_s4, 32, %s2571_s11, [#allocation6]  }
0x2e03   :  { %2160 = dma.done.wait [#allocation6], 32  }
0x2e04   :  { %2161 = vsyncadd [#allocation6], 4294967264 }
0x2e05   :  { %1642 = vsyncpa [#allocation5], 1 }
0x2e06   :  { %1643 = vsyncpa [#allocation8], 1 }
0x2e07   :  { %1644 = vsyncpa [#allocation6], 1 }

</bundles_post_ra>
